<compile_context>
chip_gen: v5e
topology: v5e:2x2
jax: 0.10.0
libtpu: 0.0.40
codegen_flags: <defaults>
</compile_context>

<pallas_src>
import math
from dataclasses import dataclass
from functools import partial

import jax
import jax.numpy as jnp
from jax.experimental import pallas as pl
from jax.experimental.pallas import tpu as pltpu


# ----------------------------------------------------------------------------- config
@dataclass
class RoformerArgs:
    dim: int = 32
    n_layers: int = 2
    n_heads: int = 4
    ffn_dim: int = 64
    norm_eps: float = 1e-5
    rope_theta: float = 10000.0


# -------------------------------------------------------------------- fused kernel
def _decoder_kernel(
    x_ref,          # (M, Cin)        f32
    lin_in_w_ref,   # (Cin, D)        f32
    bias_ref,       # (2, max(D,D1))  f32   row0 = linear_in bias, row1 = linear_1 bias
    norms_ref,      # (2L+1, D)       f32   [attn_norm_0..L-1 | ffn_norm_0..L-1 | final_norm]
    wqkv_ref,       # (L, D, 5D)      bf16  [Wq | Wk | Wv | Wq@rot | Wk@rot]
    wo_ref,         # (L, D, D)       bf16
    w13_ref,        # (L, D, 2F)      bf16  [W_gate | W_up]
    w2_ref,         # (L, F, D)       bf16
    lin1_w_ref,     # (D, D1)         f32
    lin2_w_ref,     # (D1, Cout)      f32
    cossin_ref,     # (M, 2D)         f32   [cos | sin] per row, per-head layout
    out_ref,        # (M, Cout)       f32
    *, n_layers, n_heads, head_dim, seq_len, eps,
):
    f32, bf16 = jnp.float32, jnp.bfloat16
    x = x_ref[...]
    M = x.shape[0]
    D = lin_in_w_ref.shape[1]
    D1 = lin1_w_ref.shape[1]
    T = seq_len
    H, Dh = n_heads, head_dim
    B = M // T
    L = n_layers
    scale = 1.0 / math.sqrt(Dh)

    cs = cossin_ref[...]
    cos, sin = cs[:, :D], cs[:, D:]
    norms = norms_ref[...]
    biases = bias_ref[...]

    # ---- linear_in (f32, outside autocast)
    h = jnp.dot(x, lin_in_w_ref[...], preferred_element_type=f32) + biases[0:1, :D]

    def rmsnorm(v, w):  # f32 RMSNorm (Llama-style)
        var = jnp.mean(v * v, axis=-1, keepdims=True)
        return v * jax.lax.rsqrt(var + eps) * w

    def split_heads(v):  # (M, D) f32 -> (H*B, T, Dh); row order [h, b, t]
        # only static lane slices + sublane concat + trivial major-axis reshape
        parts = [v[:, hh * Dh:(hh + 1) * Dh] for hh in range(H)]
        return jnp.concatenate(parts, axis=0).reshape(H * B, T, Dh)

    def merge_heads(o):  # (H*B, T, Dh) f32 -> (M, D)
        o2 = o.reshape(H * M, Dh)
        return jnp.concatenate(
            [o2[hh * M:(hh + 1) * M, :] for hh in range(H)], axis=-1)

    # ---- Roformer layers (bf16 autocast emulation)
    for l in range(L):
        # ------------------------------ attention block
        hb = rmsnorm(h, norms[l:l + 1]).astype(bf16)
        qkv = jnp.dot(hb, wqkv_ref[l], preferred_element_type=f32)      # (M, 5D)
        qkv = qkv.astype(bf16).astype(f32)                              # Linear output quantization
        q_lin, k_lin = qkv[:, :D], qkv[:, D:2 * D]
        v_lin = qkv[:, 2 * D:3 * D]
        q_rot, k_rot = qkv[:, 3 * D:4 * D], qkv[:, 4 * D:]

        q = q_lin * cos + q_rot * sin                                   # RoPE: elementwise only
        k = k_lin * cos + k_rot * sin

        qh = split_heads(q).astype(bf16)                                # (HB, T, Dh) bf16
        kh = split_heads(k).astype(bf16)
        vh = split_heads(v_lin).astype(bf16)

        # batched (per batch*head) non-causal attention, f32 accumulation
        s = jnp.einsum('bqd,bkd->bqk', qh, kh,
                       preferred_element_type=f32) * scale              # (HB, T, T)
        s = s - jnp.max(s, axis=-1, keepdims=True)
        p = jnp.exp(s)
        p = p * pl.reciprocal(jnp.sum(p, axis=-1, keepdims=True), approx=True)
        o = jnp.einsum('bqk,bkd->bqd', p.astype(bf16), vh,
                       preferred_element_type=f32)                      # (HB, T, Dh)
        o = merge_heads(o).astype(bf16)                                 # (M, D)
        attn = jnp.dot(o, wo_ref[l], preferred_element_type=f32)
        h = h + attn.astype(bf16).astype(f32)                           # autocast Linear -> bf16

        # ------------------------------ SwiGLU FFN block (gate|up fused, lane-dense 2F)
        hb = rmsnorm(h, norms[L + l:L + l + 1]).astype(bf16)
        gu = jnp.dot(hb, w13_ref[l], preferred_element_type=f32)
        gu = gu.astype(bf16).astype(f32)
        F = gu.shape[-1] // 2
        g, u = gu[:, :F], gu[:, F:]
        f = (g * jax.nn.sigmoid(g) * u).astype(bf16)
        ffn = jnp.dot(f, w2_ref[l], preferred_element_type=f32)
        h = h + ffn.astype(bf16).astype(f32)

    # ---- final norm + tail linears (f32, outside autocast)
    h = rmsnorm(h, norms[2 * L:2 * L + 1])
    h = jnp.dot(h, lin1_w_ref[...], preferred_element_type=f32) + biases[1:2, :D1]
    out_ref[...] = jnp.dot(h, lin2_w_ref[...], preferred_element_type=f32)  # linear_2 (bias=False)


# --------------------------------------------------------------------------- RoPE glue
def rope_cos_sin(T, Dh, theta):
    inv = 1.0 / (theta ** (jnp.arange(0, Dh, 2, dtype=jnp.float32) / Dh))  # (Dh/2,)
    t = jnp.arange(T, dtype=jnp.float32)
    freqs = jnp.outer(t, inv)                                              # (T, Dh/2)
    emb = jnp.concatenate([freqs, freqs], axis=-1)                         # (T, Dh)
    return jnp.cos(emb), jnp.sin(emb)


def rotate_half_matrix(n_heads, head_dim):
    # y = x @ R  ==  per-head rotate_half(x) = concat([-x2, x1]); used only at init
    half = head_dim // 2
    eye = jnp.eye(half, dtype=jnp.float32)
    rh = jnp.zeros((head_dim, head_dim), jnp.float32)
    rh = rh.at[half:, :half].set(-eye)
    rh = rh.at[:half, half:].set(eye)
    return jnp.kron(jnp.eye(n_heads, dtype=jnp.float32), rh)               # (D, D)


# ------------------------------------------------------------------------------ decoder
def decoder_forward(x, params, args):
    """x: (B, T, in_channel) f32 -> (B, 1, T * out_channel) f32."""
    B, T, Cin = x.shape
    D, H = args.dim, args.n_heads
    Dh = D // H
    M = B * T
    Cout = params["linear_2_w"].shape[1]

    cos, sin = rope_cos_sin(T, Dh, args.rope_theta)                  # (T, Dh)
    cossin = jnp.concatenate([jnp.tile(cos, (B, H)),
                              jnp.tile(sin, (B, H))], axis=-1)       # (M, 2D)

    vmem = pl.BlockSpec(memory_space=pltpu.MemorySpace.VMEM)
    # Grid-less on purpose: at these shapes the kernel is latency/issue-bound and
    # the whole working set fits VMEM on v5e/v6e/v7x.
    # TODO(synk): for production-size T, switch to an M-tiled grid
    # (dimension_semantics=("parallel",)) with flash-style streaming attention so
    # v7x's second TensorCore is used and its 64 MiB VMEM is not exceeded.
    out2d = pl.pallas_call(
        partial(_decoder_kernel, n_layers=args.n_layers, n_heads=H,
                head_dim=Dh, seq_len=T, eps=args.norm_eps),
        out_shape=jax.ShapeDtypeStruct((M, Cout), jnp.float32),
        in_specs=[vmem] * 11,
        out_specs=vmem,
    )(x.reshape(M, Cin),
      params["linear_in_w"], params["bias_pack"], params["norms"],
      params["wqkv5"], params["wo"], params["w13"], params["w2"],
      params["linear_1_w"], params["linear_2_w"], cossin)

    # torch.reshape(x, [B, 1, -1])
    return out2d.reshape(B, 1, T * Cout)


# ------------------------------------------------------------------------- param init
def _init_w(key, fan_in, fan_out, dtype):
    return (jax.random.normal(key, (fan_in, fan_out), dtype=jnp.float32)
            * (1.0 / math.sqrt(fan_in))).astype(dtype)


def init_decoder_params(key, in_channel, dec_channel, out_channel, args):
    keys = iter(jax.random.split(key, 64))
    D, F, L, H = args.dim, args.ffn_dim, args.n_layers, args.n_heads
    Dh = D // H
    D0, D1 = dec_channel
    rot = rotate_half_matrix(H, Dh)                 # signed permutation (exact fold)

    def qkv5(k1, k2, k3):
        wq = _init_w(k1, D, D, jnp.bfloat16)
        wk = _init_w(k2, D, D, jnp.bfloat16)
        wv = _init_w(k3, D, D, jnp.bfloat16)
        wq_rot = (wq.astype(jnp.float32) @ rot).astype(jnp.bfloat16)   # bit-exact sign/permute
        wk_rot = (wk.astype(jnp.float32) @ rot).astype(jnp.bfloat16)
        return jnp.concatenate([wq, wk, wv, wq_rot, wk_rot], axis=1)   # (D, 5D)

    wqkv5 = jnp.stack([qkv5(next(keys), next(keys), next(keys)) for _ in range(L)])
    wo = jnp.stack([_init_w(next(keys), D, D, jnp.bfloat16) for _ in range(L)])
    w13 = jnp.stack([_init_w(next(keys), D, 2 * F, jnp.bfloat16) for _ in range(L)])
    w2 = jnp.stack([_init_w(next(keys), F, D, jnp.bfloat16) for _ in range(L)])

    norms = jnp.ones((2 * L + 1, D), jnp.float32)   # [attn_0..L-1 | ffn_0..L-1 | final]

    Wb = max(D0, D1)
    bias_pack = jnp.zeros((2, Wb), jnp.float32)
    bias_pack = bias_pack.at[0, :D0].set(
        0.02 * jax.random.normal(next(keys), (D0,), dtype=jnp.float32))
    bias_pack = bias_pack.at[1, :D1].set(
        0.02 * jax.random.normal(next(keys), (D1,), dtype=jnp.float32))

    return dict(
        linear_in_w=_init_w(next(keys), in_channel, D0, jnp.float32),
        bias_pack=bias_pack,
        norms=norms,
        wqkv5=wqkv5, wo=wo, w13=w13, w2=w2,
        linear_1_w=_init_w(next(keys), D0, D1, jnp.float32),
        linear_2_w=_init_w(next(keys), D1, out_channel, jnp.float32),   # bias=False (per spec)
    )


# ------------------------------------------------------------------------------- main
if __name__ == "__main__":
    B, T = 2, 8
    in_channel = 32
    dec_channel = [32, 16]
    out_channel = 24
    args = RoformerArgs(dim=dec_channel[0], n_layers=2, n_heads=4, ffn_dim=64,
                        norm_eps=1e-5, rope_theta=10000.0)

    key = jax.random.PRNGKey(0)
    pkey, xkey = jax.random.split(key)
    params = init_decoder_params(pkey, in_channel, dec_channel, out_channel, args)
    x = jax.random.normal(xkey, (B, T, in_channel), dtype=jnp.float32)

    fwd = jax.jit(lambda xx, pp: decoder_forward(xx, pp, args))
    out = jax.block_until_ready(fwd(x, params))

    assert out.shape == (B, 1, T * out_channel), out.shape
    assert out.dtype == jnp.float32
    assert bool(jnp.all(jnp.isfinite(out)))
    print("KERNEL_OK")
</pallas_src>

<mosaic_0001>
module attributes {stable_mosaic.version = 11 : i64} {
  func.func @_decoder_kernel(%arg0: memref<16x32xf32, #tpu.memory_space<vmem>>, %arg1: memref<32x32xf32, #tpu.memory_space<vmem>>, %arg2: memref<2x32xf32, #tpu.memory_space<vmem>>, %arg3: memref<5x32xf32, #tpu.memory_space<vmem>>, %arg4: memref<2x32x160xbf16, #tpu.memory_space<vmem>>, %arg5: memref<2x32x32xbf16, #tpu.memory_space<vmem>>, %arg6: memref<2x32x128xbf16, #tpu.memory_space<vmem>>, %arg7: memref<2x64x32xbf16, #tpu.memory_space<vmem>>, %arg8: memref<32x16xf32, #tpu.memory_space<vmem>>, %arg9: memref<16x24xf32, #tpu.memory_space<vmem>>, %arg10: memref<16x64xf32, #tpu.memory_space<vmem>>, %arg11: memref<16x24xf32, #tpu.memory_space<vmem>>) attributes {dimension_semantics = [], scalar_prefetch = 0 : i64, scratch_operands = 0 : i64, tpu.core_type = #tpu.core_type<tc>} {
    %c0 = arith.constant 0 : index
    %c0_0 = arith.constant 0 : index
    %0 = vector.load %arg0[%c0, %c0_0] : memref<16x32xf32, #tpu.memory_space<vmem>>, vector<16x32xf32>
    %c0_1 = arith.constant 0 : index
    %c0_2 = arith.constant 0 : index
    %1 = vector.load %arg10[%c0_1, %c0_2] : memref<16x64xf32, #tpu.memory_space<vmem>>, vector<16x64xf32>
    %2 = vector.extract_strided_slice %1 {offsets = [0, 0], sizes = [16, 32], strides = [1, 1]} : vector<16x64xf32> to vector<16x32xf32>
    %3 = vector.extract_strided_slice %1 {offsets = [0, 32], sizes = [16, 32], strides = [1, 1]} : vector<16x64xf32> to vector<16x32xf32>
    %c0_3 = arith.constant 0 : index
    %c0_4 = arith.constant 0 : index
    %4 = vector.load %arg3[%c0_3, %c0_4] : memref<5x32xf32, #tpu.memory_space<vmem>>, vector<5x32xf32>
    %c0_5 = arith.constant 0 : index
    %c0_6 = arith.constant 0 : index
    %5 = vector.load %arg2[%c0_5, %c0_6] : memref<2x32xf32, #tpu.memory_space<vmem>>, vector<2x32xf32>
    %c0_7 = arith.constant 0 : index
    %c0_8 = arith.constant 0 : index
    %6 = vector.load %arg1[%c0_7, %c0_8] : memref<32x32xf32, #tpu.memory_space<vmem>>, vector<32x32xf32>
    %cst = arith.constant dense<0.000000e+00> : vector<16x32xf32>
    %7 = tpu.matmul %0, %6, %cst {dimension_numbers = #tpu.dot_dimension_numbers<[1], [0], [0], [1], [0, 0, 1, 1], [], []>} : vector<16x32xf32>, vector<32x32xf32>, vector<16x32xf32> -> vector<16x32xf32>
    %8 = vector.extract_strided_slice %5 {offsets = [0, 0], sizes = [1, 32], strides = [1, 1]} : vector<2x32xf32> to vector<1x32xf32>
    %9 = vector.broadcast %8 : vector<1x32xf32> to vector<16x32xf32>
    %10 = arith.addf %7, %9 : vector<16x32xf32>
    %11 = vector.extract_strided_slice %4 {offsets = [0, 0], sizes = [1, 32], strides = [1, 1]} : vector<5x32xf32> to vector<1x32xf32>
    %12 = arith.mulf %10, %10 : vector<16x32xf32>
    %cst_9 = arith.constant dense<0.000000e+00> : vector<16xf32>
    %13 = vector.multi_reduction <add>, %12, %cst_9 [1] : vector<16x32xf32> to vector<16xf32>
    %14 = vector.shape_cast %13 : vector<16xf32> to vector<16x1xf32>
    %cst_10 = arith.constant 3.200000e+01 : f32
    %15 = vector.broadcast %cst_10 : f32 to vector<16x1xf32>
    %16 = arith.divf %14, %15 : vector<16x1xf32>
    %cst_11 = arith.constant 9.99999974E-6 : f32
    %17 = vector.broadcast %cst_11 : f32 to vector<16x1xf32>
    %18 = arith.addf %16, %17 : vector<16x1xf32>
    %19 = math.rsqrt %18 : vector<16x1xf32>
    %20 = vector.broadcast %19 : vector<16x1xf32> to vector<16x32xf32>
    %21 = arith.mulf %10, %20 : vector<16x32xf32>
    %22 = vector.broadcast %11 : vector<1x32xf32> to vector<16x32xf32>
    %23 = arith.mulf %21, %22 : vector<16x32xf32>
    %24 = arith.truncf %23 : vector<16x32xf32> to vector<16x32xbf16>
    %c0_12 = arith.constant 0 : index
    %c0_13 = arith.constant 0 : index
    %c0_14 = arith.constant 0 : index
    %25 = vector.load %arg4[%c0_12, %c0_13, %c0_14] : memref<2x32x160xbf16, #tpu.memory_space<vmem>>, vector<1x32x160xbf16>
    %26 = vector.shape_cast %25 : vector<1x32x160xbf16> to vector<32x160xbf16>
    %cst_15 = arith.constant dense<0.000000e+00> : vector<16x160xf32>
    %27 = tpu.matmul %24, %26, %cst_15 {dimension_numbers = #tpu.dot_dimension_numbers<[1], [0], [0], [1], [0, 0, 1, 1], [], []>} : vector<16x32xbf16>, vector<32x160xbf16>, vector<16x160xf32> -> vector<16x160xf32>
    %28 = arith.truncf %27 : vector<16x160xf32> to vector<16x160xbf16>
    %29 = arith.extf %28 : vector<16x160xbf16> to vector<16x160xf32>
    %30 = vector.extract_strided_slice %29 {offsets = [0, 0], sizes = [16, 32], strides = [1, 1]} : vector<16x160xf32> to vector<16x32xf32>
    %31 = vector.extract_strided_slice %29 {offsets = [0, 32], sizes = [16, 32], strides = [1, 1]} : vector<16x160xf32> to vector<16x32xf32>
    %32 = vector.extract_strided_slice %29 {offsets = [0, 64], sizes = [16, 32], strides = [1, 1]} : vector<16x160xf32> to vector<16x32xf32>
    %33 = vector.extract_strided_slice %29 {offsets = [0, 96], sizes = [16, 32], strides = [1, 1]} : vector<16x160xf32> to vector<16x32xf32>
    %34 = vector.extract_strided_slice %29 {offsets = [0, 128], sizes = [16, 32], strides = [1, 1]} : vector<16x160xf32> to vector<16x32xf32>
    %35 = arith.mulf %30, %2 : vector<16x32xf32>
    %36 = arith.mulf %33, %3 : vector<16x32xf32>
    %37 = arith.addf %35, %36 : vector<16x32xf32>
    %38 = arith.mulf %31, %2 : vector<16x32xf32>
    %39 = arith.mulf %34, %3 : vector<16x32xf32>
    %40 = arith.addf %38, %39 : vector<16x32xf32>
    %41 = vector.extract_strided_slice %37 {offsets = [0, 0], sizes = [16, 8], strides = [1, 1]} : vector<16x32xf32> to vector<16x8xf32>
    %42 = vector.extract_strided_slice %37 {offsets = [0, 8], sizes = [16, 8], strides = [1, 1]} : vector<16x32xf32> to vector<16x8xf32>
    %43 = vector.extract_strided_slice %37 {offsets = [0, 16], sizes = [16, 8], strides = [1, 1]} : vector<16x32xf32> to vector<16x8xf32>
    %44 = vector.extract_strided_slice %37 {offsets = [0, 24], sizes = [16, 8], strides = [1, 1]} : vector<16x32xf32> to vector<16x8xf32>
    %45 = tpu.concatenate %41, %42, %43, %44 in 0 : vector<16x8xf32>, vector<16x8xf32>, vector<16x8xf32>, vector<16x8xf32> -> vector<64x8xf32>
    %46 = vector.shape_cast %45 : vector<64x8xf32> to vector<8x8x8xf32>
    %47 = arith.truncf %46 : vector<8x8x8xf32> to vector<8x8x8xbf16>
    %48 = vector.extract_strided_slice %40 {offsets = [0, 0], sizes = [16, 8], strides = [1, 1]} : vector<16x32xf32> to vector<16x8xf32>
    %49 = vector.extract_strided_slice %40 {offsets = [0, 8], sizes = [16, 8], strides = [1, 1]} : vector<16x32xf32> to vector<16x8xf32>
    %50 = vector.extract_strided_slice %40 {offsets = [0, 16], sizes = [16, 8], strides = [1, 1]} : vector<16x32xf32> to vector<16x8xf32>
    %51 = vector.extract_strided_slice %40 {offsets = [0, 24], sizes = [16, 8], strides = [1, 1]} : vector<16x32xf32> to vector<16x8xf32>
    %52 = tpu.concatenate %48, %49, %50, %51 in 0 : vector<16x8xf32>, vector<16x8xf32>, vector<16x8xf32>, vector<16x8xf32> -> vector<64x8xf32>
    %53 = vector.shape_cast %52 : vector<64x8xf32> to vector<8x8x8xf32>
    %54 = arith.truncf %53 : vector<8x8x8xf32> to vector<8x8x8xbf16>
    %55 = vector.extract_strided_slice %32 {offsets = [0, 0], sizes = [16, 8], strides = [1, 1]} : vector<16x32xf32> to vector<16x8xf32>
    %56 = vector.extract_strided_slice %32 {offsets = [0, 8], sizes = [16, 8], strides = [1, 1]} : vector<16x32xf32> to vector<16x8xf32>
    %57 = vector.extract_strided_slice %32 {offsets = [0, 16], sizes = [16, 8], strides = [1, 1]} : vector<16x32xf32> to vector<16x8xf32>
    %58 = vector.extract_strided_slice %32 {offsets = [0, 24], sizes = [16, 8], strides = [1, 1]} : vector<16x32xf32> to vector<16x8xf32>
    %59 = tpu.concatenate %55, %56, %57, %58 in 0 : vector<16x8xf32>, vector<16x8xf32>, vector<16x8xf32>, vector<16x8xf32> -> vector<64x8xf32>
    %60 = vector.shape_cast %59 : vector<64x8xf32> to vector<8x8x8xf32>
    %61 = arith.truncf %60 : vector<8x8x8xf32> to vector<8x8x8xbf16>
    "tpu.trace_start"() <{level = 10 : i32, message = "bqd,bkd->bqk"}> : () -> ()
    %cst_16 = arith.constant dense<0.000000e+00> : vector<8x8x8xf32>
    %62 = tpu.matmul %47, %54, %cst_16 {dimension_numbers = #tpu.dot_dimension_numbers<[2], [2], [1], [1], [0, 0, 0, 1, 1, 1], [0], [0]>} : vector<8x8x8xbf16>, vector<8x8x8xbf16>, vector<8x8x8xf32> -> vector<8x8x8xf32>
    "tpu.trace_stop"() : () -> ()
    %cst_17 = arith.constant 0.353553385 : f32
    %63 = vector.broadcast %cst_17 : f32 to vector<8x8x8xf32>
    %64 = arith.mulf %62, %63 : vector<8x8x8xf32>
    %cst_18 = arith.constant dense<0xFF800000> : vector<8x8xf32>
    %65 = vector.multi_reduction <maximumf>, %64, %cst_18 [2] : vector<8x8x8xf32> to vector<8x8xf32>
    %66 = vector.shape_cast %65 : vector<8x8xf32> to vector<8x8x1xf32>
    %67 = vector.broadcast %66 : vector<8x8x1xf32> to vector<8x8x8xf32>
    %68 = arith.subf %64, %67 : vector<8x8x8xf32>
    %69 = math.exp %68 : vector<8x8x8xf32>
    %cst_19 = arith.constant dense<0.000000e+00> : vector<8x8xf32>
    %70 = vector.multi_reduction <add>, %69, %cst_19 [2] : vector<8x8x8xf32> to vector<8x8xf32>
    %71 = vector.shape_cast %70 : vector<8x8xf32> to vector<8x8x1xf32>
    %72 = tpu.reciprocal %71 {approx = true} : vector<8x8x1xf32> -> vector<8x8x1xf32>
    %73 = vector.broadcast %72 : vector<8x8x1xf32> to vector<8x8x8xf32>
    %74 = arith.mulf %69, %73 : vector<8x8x8xf32>
    %75 = arith.truncf %74 : vector<8x8x8xf32> to vector<8x8x8xbf16>
    "tpu.trace_start"() <{level = 10 : i32, message = "bqk,bkd->bqd"}> : () -> ()
    %cst_20 = arith.constant dense<0.000000e+00> : vector<8x8x8xf32>
    %76 = tpu.matmul %75, %61, %cst_20 {dimension_numbers = #tpu.dot_dimension_numbers<[2], [1], [1], [2], [0, 0, 0, 1, 1, 2], [0], [0]>} : vector<8x8x8xbf16>, vector<8x8x8xbf16>, vector<8x8x8xf32> -> vector<8x8x8xf32>
    "tpu.trace_stop"() : () -> ()
    %77 = vector.shape_cast %76 : vector<8x8x8xf32> to vector<64x8xf32>
    %78 = vector.extract_strided_slice %77 {offsets = [0, 0], sizes = [16, 8], strides = [1, 1]} : vector<64x8xf32> to vector<16x8xf32>
    %79 = vector.extract_strided_slice %77 {offsets = [16, 0], sizes = [16, 8], strides = [1, 1]} : vector<64x8xf32> to vector<16x8xf32>
    %80 = vector.extract_strided_slice %77 {offsets = [32, 0], sizes = [16, 8], strides = [1, 1]} : vector<64x8xf32> to vector<16x8xf32>
    %81 = vector.extract_strided_slice %77 {offsets = [48, 0], sizes = [16, 8], strides = [1, 1]} : vector<64x8xf32> to vector<16x8xf32>
    %82 = tpu.concatenate %78, %79, %80, %81 in 1 : vector<16x8xf32>, vector<16x8xf32>, vector<16x8xf32>, vector<16x8xf32> -> vector<16x32xf32>
    %83 = arith.truncf %82 : vector<16x32xf32> to vector<16x32xbf16>
    %c0_21 = arith.constant 0 : index
    %c0_22 = arith.constant 0 : index
    %c0_23 = arith.constant 0 : index
    %84 = vector.load %arg5[%c0_21, %c0_22, %c0_23] : memref<2x32x32xbf16, #tpu.memory_space<vmem>>, vector<1x32x32xbf16>
    %85 = vector.shape_cast %84 : vector<1x32x32xbf16> to vector<32x32xbf16>
    %cst_24 = arith.constant dense<0.000000e+00> : vector<16x32xf32>
    %86 = tpu.matmul %83, %85, %cst_24 {dimension_numbers = #tpu.dot_dimension_numbers<[1], [0], [0], [1], [0, 0, 1, 1], [], []>} : vector<16x32xbf16>, vector<32x32xbf16>, vector<16x32xf32> -> vector<16x32xf32>
    %87 = arith.truncf %86 : vector<16x32xf32> to vector<16x32xbf16>
    %88 = arith.extf %87 : vector<16x32xbf16> to vector<16x32xf32>
    %89 = arith.addf %10, %88 : vector<16x32xf32>
    %90 = vector.extract_strided_slice %4 {offsets = [2, 0], sizes = [1, 32], strides = [1, 1]} : vector<5x32xf32> to vector<1x32xf32>
    %91 = arith.mulf %89, %89 : vector<16x32xf32>
    %cst_25 = arith.constant dense<0.000000e+00> : vector<16xf32>
    %92 = vector.multi_reduction <add>, %91, %cst_25 [1] : vector<16x32xf32> to vector<16xf32>
    %93 = vector.shape_cast %92 : vector<16xf32> to vector<16x1xf32>
    %cst_26 = arith.constant 3.200000e+01 : f32
    %94 = vector.broadcast %cst_26 : f32 to vector<16x1xf32>
    %95 = arith.divf %93, %94 : vector<16x1xf32>
    %cst_27 = arith.constant 9.99999974E-6 : f32
    %96 = vector.broadcast %cst_27 : f32 to vector<16x1xf32>
    %97 = arith.addf %95, %96 : vector<16x1xf32>
    %98 = math.rsqrt %97 : vector<16x1xf32>
    %99 = vector.broadcast %98 : vector<16x1xf32> to vector<16x32xf32>
    %100 = arith.mulf %89, %99 : vector<16x32xf32>
    %101 = vector.broadcast %90 : vector<1x32xf32> to vector<16x32xf32>
    %102 = arith.mulf %100, %101 : vector<16x32xf32>
    %103 = arith.truncf %102 : vector<16x32xf32> to vector<16x32xbf16>
    %c0_28 = arith.constant 0 : index
    %c0_29 = arith.constant 0 : index
    %c0_30 = arith.constant 0 : index
    %104 = vector.load %arg6[%c0_28, %c0_29, %c0_30] : memref<2x32x128xbf16, #tpu.memory_space<vmem>>, vector<1x32x128xbf16>
    %105 = vector.shape_cast %104 : vector<1x32x128xbf16> to vector<32x128xbf16>
    %cst_31 = arith.constant dense<0.000000e+00> : vector<16x128xf32>
    %106 = tpu.matmul %103, %105, %cst_31 {dimension_numbers = #tpu.dot_dimension_numbers<[1], [0], [0], [1], [0, 0, 1, 1], [], []>} : vector<16x32xbf16>, vector<32x128xbf16>, vector<16x128xf32> -> vector<16x128xf32>
    %107 = arith.truncf %106 : vector<16x128xf32> to vector<16x128xbf16>
    %108 = arith.extf %107 : vector<16x128xbf16> to vector<16x128xf32>
    %109 = vector.extract_strided_slice %108 {offsets = [0, 0], sizes = [16, 64], strides = [1, 1]} : vector<16x128xf32> to vector<16x64xf32>
    %110 = vector.extract_strided_slice %108 {offsets = [0, 64], sizes = [16, 64], strides = [1, 1]} : vector<16x128xf32> to vector<16x64xf32>
    %111 = arith.negf %109 : vector<16x64xf32>
    %112 = math.exp %111 : vector<16x64xf32>
    %cst_32 = arith.constant 1.000000e+00 : f32
    %113 = vector.broadcast %cst_32 : f32 to vector<16x64xf32>
    %114 = arith.addf %113, %112 : vector<16x64xf32>
    %115 = arith.divf %113, %114 : vector<16x64xf32>
    %116 = arith.mulf %109, %115 : vector<16x64xf32>
    %117 = arith.mulf %116, %110 : vector<16x64xf32>
    %118 = arith.truncf %117 : vector<16x64xf32> to vector<16x64xbf16>
    %c0_33 = arith.constant 0 : index
    %c0_34 = arith.constant 0 : index
    %c0_35 = arith.constant 0 : index
    %119 = vector.load %arg7[%c0_33, %c0_34, %c0_35] : memref<2x64x32xbf16, #tpu.memory_space<vmem>>, vector<1x64x32xbf16>
    %120 = vector.shape_cast %119 : vector<1x64x32xbf16> to vector<64x32xbf16>
    %cst_36 = arith.constant dense<0.000000e+00> : vector<16x32xf32>
    %121 = tpu.matmul %118, %120, %cst_36 {dimension_numbers = #tpu.dot_dimension_numbers<[1], [0], [0], [1], [0, 0, 1, 1], [], []>} : vector<16x64xbf16>, vector<64x32xbf16>, vector<16x32xf32> -> vector<16x32xf32>
    %122 = arith.truncf %121 : vector<16x32xf32> to vector<16x32xbf16>
    %123 = arith.extf %122 : vector<16x32xbf16> to vector<16x32xf32>
    %124 = arith.addf %89, %123 : vector<16x32xf32>
    %125 = vector.extract_strided_slice %4 {offsets = [1, 0], sizes = [1, 32], strides = [1, 1]} : vector<5x32xf32> to vector<1x32xf32>
    %126 = arith.mulf %124, %124 : vector<16x32xf32>
    %cst_37 = arith.constant dense<0.000000e+00> : vector<16xf32>
    %127 = vector.multi_reduction <add>, %126, %cst_37 [1] : vector<16x32xf32> to vector<16xf32>
    %128 = vector.shape_cast %127 : vector<16xf32> to vector<16x1xf32>
    %cst_38 = arith.constant 3.200000e+01 : f32
    %129 = vector.broadcast %cst_38 : f32 to vector<16x1xf32>
    %130 = arith.divf %128, %129 : vector<16x1xf32>
    %cst_39 = arith.constant 9.99999974E-6 : f32
    %131 = vector.broadcast %cst_39 : f32 to vector<16x1xf32>
    %132 = arith.addf %130, %131 : vector<16x1xf32>
    %133 = math.rsqrt %132 : vector<16x1xf32>
    %134 = vector.broadcast %133 : vector<16x1xf32> to vector<16x32xf32>
    %135 = arith.mulf %124, %134 : vector<16x32xf32>
    %136 = vector.broadcast %125 : vector<1x32xf32> to vector<16x32xf32>
    %137 = arith.mulf %135, %136 : vector<16x32xf32>
    %138 = arith.truncf %137 : vector<16x32xf32> to vector<16x32xbf16>
    %c1 = arith.constant 1 : index
    %c0_40 = arith.constant 0 : index
    %c0_41 = arith.constant 0 : index
    %139 = vector.load %arg4[%c1, %c0_40, %c0_41] : memref<2x32x160xbf16, #tpu.memory_space<vmem>>, vector<1x32x160xbf16>
    %140 = vector.shape_cast %139 : vector<1x32x160xbf16> to vector<32x160xbf16>
    %cst_42 = arith.constant dense<0.000000e+00> : vector<16x160xf32>
    %141 = tpu.matmul %138, %140, %cst_42 {dimension_numbers = #tpu.dot_dimension_numbers<[1], [0], [0], [1], [0, 0, 1, 1], [], []>} : vector<16x32xbf16>, vector<32x160xbf16>, vector<16x160xf32> -> vector<16x160xf32>
    %142 = arith.truncf %141 : vector<16x160xf32> to vector<16x160xbf16>
    %143 = arith.extf %142 : vector<16x160xbf16> to vector<16x160xf32>
    %144 = vector.extract_strided_slice %143 {offsets = [0, 0], sizes = [16, 32], strides = [1, 1]} : vector<16x160xf32> to vector<16x32xf32>
    %145 = vector.extract_strided_slice %143 {offsets = [0, 32], sizes = [16, 32], strides = [1, 1]} : vector<16x160xf32> to vector<16x32xf32>
    %146 = vector.extract_strided_slice %143 {offsets = [0, 64], sizes = [16, 32], strides = [1, 1]} : vector<16x160xf32> to vector<16x32xf32>
    %147 = vector.extract_strided_slice %143 {offsets = [0, 96], sizes = [16, 32], strides = [1, 1]} : vector<16x160xf32> to vector<16x32xf32>
    %148 = vector.extract_strided_slice %143 {offsets = [0, 128], sizes = [16, 32], strides = [1, 1]} : vector<16x160xf32> to vector<16x32xf32>
    %149 = arith.mulf %144, %2 : vector<16x32xf32>
    %150 = arith.mulf %147, %3 : vector<16x32xf32>
    %151 = arith.addf %149, %150 : vector<16x32xf32>
    %152 = arith.mulf %145, %2 : vector<16x32xf32>
    %153 = arith.mulf %148, %3 : vector<16x32xf32>
    %154 = arith.addf %152, %153 : vector<16x32xf32>
    %155 = vector.extract_strided_slice %151 {offsets = [0, 0], sizes = [16, 8], strides = [1, 1]} : vector<16x32xf32> to vector<16x8xf32>
    %156 = vector.extract_strided_slice %151 {offsets = [0, 8], sizes = [16, 8], strides = [1, 1]} : vector<16x32xf32> to vector<16x8xf32>
    %157 = vector.extract_strided_slice %151 {offsets = [0, 16], sizes = [16, 8], strides = [1, 1]} : vector<16x32xf32> to vector<16x8xf32>
    %158 = vector.extract_strided_slice %151 {offsets = [0, 24], sizes = [16, 8], strides = [1, 1]} : vector<16x32xf32> to vector<16x8xf32>
    %159 = tpu.concatenate %155, %156, %157, %158 in 0 : vector<16x8xf32>, vector<16x8xf32>, vector<16x8xf32>, vector<16x8xf32> -> vector<64x8xf32>
    %160 = vector.shape_cast %159 : vector<64x8xf32> to vector<8x8x8xf32>
    %161 = arith.truncf %160 : vector<8x8x8xf32> to vector<8x8x8xbf16>
    %162 = vector.extract_strided_slice %154 {offsets = [0, 0], sizes = [16, 8], strides = [1, 1]} : vector<16x32xf32> to vector<16x8xf32>
    %163 = vector.extract_strided_slice %154 {offsets = [0, 8], sizes = [16, 8], strides = [1, 1]} : vector<16x32xf32> to vector<16x8xf32>
    %164 = vector.extract_strided_slice %154 {offsets = [0, 16], sizes = [16, 8], strides = [1, 1]} : vector<16x32xf32> to vector<16x8xf32>
    %165 = vector.extract_strided_slice %154 {offsets = [0, 24], sizes = [16, 8], strides = [1, 1]} : vector<16x32xf32> to vector<16x8xf32>
    %166 = tpu.concatenate %162, %163, %164, %165 in 0 : vector<16x8xf32>, vector<16x8xf32>, vector<16x8xf32>, vector<16x8xf32> -> vector<64x8xf32>
    %167 = vector.shape_cast %166 : vector<64x8xf32> to vector<8x8x8xf32>
    %168 = arith.truncf %167 : vector<8x8x8xf32> to vector<8x8x8xbf16>
    %169 = vector.extract_strided_slice %146 {offsets = [0, 0], sizes = [16, 8], strides = [1, 1]} : vector<16x32xf32> to vector<16x8xf32>
    %170 = vector.extract_strided_slice %146 {offsets = [0, 8], sizes = [16, 8], strides = [1, 1]} : vector<16x32xf32> to vector<16x8xf32>
    %171 = vector.extract_strided_slice %146 {offsets = [0, 16], sizes = [16, 8], strides = [1, 1]} : vector<16x32xf32> to vector<16x8xf32>
    %172 = vector.extract_strided_slice %146 {offsets = [0, 24], sizes = [16, 8], strides = [1, 1]} : vector<16x32xf32> to vector<16x8xf32>
    %173 = tpu.concatenate %169, %170, %171, %172 in 0 : vector<16x8xf32>, vector<16x8xf32>, vector<16x8xf32>, vector<16x8xf32> -> vector<64x8xf32>
    %174 = vector.shape_cast %173 : vector<64x8xf32> to vector<8x8x8xf32>
    %175 = arith.truncf %174 : vector<8x8x8xf32> to vector<8x8x8xbf16>
    "tpu.trace_start"() <{level = 10 : i32, message = "bqd,bkd->bqk"}> : () -> ()
    %cst_43 = arith.constant dense<0.000000e+00> : vector<8x8x8xf32>
    %176 = tpu.matmul %161, %168, %cst_43 {dimension_numbers = #tpu.dot_dimension_numbers<[2], [2], [1], [1], [0, 0, 0, 1, 1, 1], [0], [0]>} : vector<8x8x8xbf16>, vector<8x8x8xbf16>, vector<8x8x8xf32> -> vector<8x8x8xf32>
    "tpu.trace_stop"() : () -> ()
    %cst_44 = arith.constant 0.353553385 : f32
    %177 = vector.broadcast %cst_44 : f32 to vector<8x8x8xf32>
    %178 = arith.mulf %176, %177 : vector<8x8x8xf32>
    %cst_45 = arith.constant dense<0xFF800000> : vector<8x8xf32>
    %179 = vector.multi_reduction <maximumf>, %178, %cst_45 [2] : vector<8x8x8xf32> to vector<8x8xf32>
    %180 = vector.shape_cast %179 : vector<8x8xf32> to vector<8x8x1xf32>
    %181 = vector.broadcast %180 : vector<8x8x1xf32> to vector<8x8x8xf32>
    %182 = arith.subf %178, %181 : vector<8x8x8xf32>
    %183 = math.exp %182 : vector<8x8x8xf32>
    %cst_46 = arith.constant dense<0.000000e+00> : vector<8x8xf32>
    %184 = vector.multi_reduction <add>, %183, %cst_46 [2] : vector<8x8x8xf32> to vector<8x8xf32>
    %185 = vector.shape_cast %184 : vector<8x8xf32> to vector<8x8x1xf32>
    %186 = tpu.reciprocal %185 {approx = true} : vector<8x8x1xf32> -> vector<8x8x1xf32>
    %187 = vector.broadcast %186 : vector<8x8x1xf32> to vector<8x8x8xf32>
    %188 = arith.mulf %183, %187 : vector<8x8x8xf32>
    %189 = arith.truncf %188 : vector<8x8x8xf32> to vector<8x8x8xbf16>
    "tpu.trace_start"() <{level = 10 : i32, message = "bqk,bkd->bqd"}> : () -> ()
    %cst_47 = arith.constant dense<0.000000e+00> : vector<8x8x8xf32>
    %190 = tpu.matmul %189, %175, %cst_47 {dimension_numbers = #tpu.dot_dimension_numbers<[2], [1], [1], [2], [0, 0, 0, 1, 1, 2], [0], [0]>} : vector<8x8x8xbf16>, vector<8x8x8xbf16>, vector<8x8x8xf32> -> vector<8x8x8xf32>
    "tpu.trace_stop"() : () -> ()
    %191 = vector.shape_cast %190 : vector<8x8x8xf32> to vector<64x8xf32>
    %192 = vector.extract_strided_slice %191 {offsets = [0, 0], sizes = [16, 8], strides = [1, 1]} : vector<64x8xf32> to vector<16x8xf32>
    %193 = vector.extract_strided_slice %191 {offsets = [16, 0], sizes = [16, 8], strides = [1, 1]} : vector<64x8xf32> to vector<16x8xf32>
    %194 = vector.extract_strided_slice %191 {offsets = [32, 0], sizes = [16, 8], strides = [1, 1]} : vector<64x8xf32> to vector<16x8xf32>
    %195 = vector.extract_strided_slice %191 {offsets = [48, 0], sizes = [16, 8], strides = [1, 1]} : vector<64x8xf32> to vector<16x8xf32>
    %196 = tpu.concatenate %192, %193, %194, %195 in 1 : vector<16x8xf32>, vector<16x8xf32>, vector<16x8xf32>, vector<16x8xf32> -> vector<16x32xf32>
    %197 = arith.truncf %196 : vector<16x32xf32> to vector<16x32xbf16>
    %c1_48 = arith.constant 1 : index
    %c0_49 = arith.constant 0 : index
    %c0_50 = arith.constant 0 : index
    %198 = vector.load %arg5[%c1_48, %c0_49, %c0_50] : memref<2x32x32xbf16, #tpu.memory_space<vmem>>, vector<1x32x32xbf16>
    %199 = vector.shape_cast %198 : vector<1x32x32xbf16> to vector<32x32xbf16>
    %cst_51 = arith.constant dense<0.000000e+00> : vector<16x32xf32>
    %200 = tpu.matmul %197, %199, %cst_51 {dimension_numbers = #tpu.dot_dimension_numbers<[1], [0], [0], [1], [0, 0, 1, 1], [], []>} : vector<16x32xbf16>, vector<32x32xbf16>, vector<16x32xf32> -> vector<16x32xf32>
    %201 = arith.truncf %200 : vector<16x32xf32> to vector<16x32xbf16>
    %202 = arith.extf %201 : vector<16x32xbf16> to vector<16x32xf32>
    %203 = arith.addf %124, %202 : vector<16x32xf32>
    %204 = vector.extract_strided_slice %4 {offsets = [3, 0], sizes = [1, 32], strides = [1, 1]} : vector<5x32xf32> to vector<1x32xf32>
    %205 = arith.mulf %203, %203 : vector<16x32xf32>
    %cst_52 = arith.constant dense<0.000000e+00> : vector<16xf32>
    %206 = vector.multi_reduction <add>, %205, %cst_52 [1] : vector<16x32xf32> to vector<16xf32>
    %207 = vector.shape_cast %206 : vector<16xf32> to vector<16x1xf32>
    %cst_53 = arith.constant 3.200000e+01 : f32
    %208 = vector.broadcast %cst_53 : f32 to vector<16x1xf32>
    %209 = arith.divf %207, %208 : vector<16x1xf32>
    %cst_54 = arith.constant 9.99999974E-6 : f32
    %210 = vector.broadcast %cst_54 : f32 to vector<16x1xf32>
    %211 = arith.addf %209, %210 : vector<16x1xf32>
    %212 = math.rsqrt %211 : vector<16x1xf32>
    %213 = vector.broadcast %212 : vector<16x1xf32> to vector<16x32xf32>
    %214 = arith.mulf %203, %213 : vector<16x32xf32>
    %215 = vector.broadcast %204 : vector<1x32xf32> to vector<16x32xf32>
    %216 = arith.mulf %214, %215 : vector<16x32xf32>
    %217 = arith.truncf %216 : vector<16x32xf32> to vector<16x32xbf16>
    %c1_55 = arith.constant 1 : index
    %c0_56 = arith.constant 0 : index
    %c0_57 = arith.constant 0 : index
    %218 = vector.load %arg6[%c1_55, %c0_56, %c0_57] : memref<2x32x128xbf16, #tpu.memory_space<vmem>>, vector<1x32x128xbf16>
    %219 = vector.shape_cast %218 : vector<1x32x128xbf16> to vector<32x128xbf16>
    %cst_58 = arith.constant dense<0.000000e+00> : vector<16x128xf32>
    %220 = tpu.matmul %217, %219, %cst_58 {dimension_numbers = #tpu.dot_dimension_numbers<[1], [0], [0], [1], [0, 0, 1, 1], [], []>} : vector<16x32xbf16>, vector<32x128xbf16>, vector<16x128xf32> -> vector<16x128xf32>
    %221 = arith.truncf %220 : vector<16x128xf32> to vector<16x128xbf16>
    %222 = arith.extf %221 : vector<16x128xbf16> to vector<16x128xf32>
    %223 = vector.extract_strided_slice %222 {offsets = [0, 0], sizes = [16, 64], strides = [1, 1]} : vector<16x128xf32> to vector<16x64xf32>
    %224 = vector.extract_strided_slice %222 {offsets = [0, 64], sizes = [16, 64], strides = [1, 1]} : vector<16x128xf32> to vector<16x64xf32>
    %225 = arith.negf %223 : vector<16x64xf32>
    %226 = math.exp %225 : vector<16x64xf32>
    %cst_59 = arith.constant 1.000000e+00 : f32
    %227 = vector.broadcast %cst_59 : f32 to vector<16x64xf32>
    %228 = arith.addf %227, %226 : vector<16x64xf32>
    %229 = arith.divf %227, %228 : vector<16x64xf32>
    %230 = arith.mulf %223, %229 : vector<16x64xf32>
    %231 = arith.mulf %230, %224 : vector<16x64xf32>
    %232 = arith.truncf %231 : vector<16x64xf32> to vector<16x64xbf16>
    %c1_60 = arith.constant 1 : index
    %c0_61 = arith.constant 0 : index
    %c0_62 = arith.constant 0 : index
    %233 = vector.load %arg7[%c1_60, %c0_61, %c0_62] : memref<2x64x32xbf16, #tpu.memory_space<vmem>>, vector<1x64x32xbf16>
    %234 = vector.shape_cast %233 : vector<1x64x32xbf16> to vector<64x32xbf16>
    %cst_63 = arith.constant dense<0.000000e+00> : vector<16x32xf32>
    %235 = tpu.matmul %232, %234, %cst_63 {dimension_numbers = #tpu.dot_dimension_numbers<[1], [0], [0], [1], [0, 0, 1, 1], [], []>} : vector<16x64xbf16>, vector<64x32xbf16>, vector<16x32xf32> -> vector<16x32xf32>
    %236 = arith.truncf %235 : vector<16x32xf32> to vector<16x32xbf16>
    %237 = arith.extf %236 : vector<16x32xbf16> to vector<16x32xf32>
    %238 = arith.addf %203, %237 : vector<16x32xf32>
    %239 = vector.extract_strided_slice %4 {offsets = [4, 0], sizes = [1, 32], strides = [1, 1]} : vector<5x32xf32> to vector<1x32xf32>
    %240 = arith.mulf %238, %238 : vector<16x32xf32>
    %cst_64 = arith.constant dense<0.000000e+00> : vector<16xf32>
    %241 = vector.multi_reduction <add>, %240, %cst_64 [1] : vector<16x32xf32> to vector<16xf32>
    %242 = vector.shape_cast %241 : vector<16xf32> to vector<16x1xf32>
    %cst_65 = arith.constant 3.200000e+01 : f32
    %243 = vector.broadcast %cst_65 : f32 to vector<16x1xf32>
    %244 = arith.divf %242, %243 : vector<16x1xf32>
    %cst_66 = arith.constant 9.99999974E-6 : f32
    %245 = vector.broadcast %cst_66 : f32 to vector<16x1xf32>
    %246 = arith.addf %244, %245 : vector<16x1xf32>
    %247 = math.rsqrt %246 : vector<16x1xf32>
    %248 = vector.broadcast %247 : vector<16x1xf32> to vector<16x32xf32>
    %249 = arith.mulf %238, %248 : vector<16x32xf32>
    %250 = vector.broadcast %239 : vector<1x32xf32> to vector<16x32xf32>
    %251 = arith.mulf %249, %250 : vector<16x32xf32>
    %c0_67 = arith.constant 0 : index
    %c0_68 = arith.constant 0 : index
    %252 = vector.load %arg8[%c0_67, %c0_68] : memref<32x16xf32, #tpu.memory_space<vmem>>, vector<32x16xf32>
    %cst_69 = arith.constant dense<0.000000e+00> : vector<16x16xf32>
    %253 = tpu.matmul %251, %252, %cst_69 {dimension_numbers = #tpu.dot_dimension_numbers<[1], [0], [0], [1], [0, 0, 1, 1], [], []>} : vector<16x32xf32>, vector<32x16xf32>, vector<16x16xf32> -> vector<16x16xf32>
    %254 = vector.extract_strided_slice %5 {offsets = [1, 0], sizes = [1, 16], strides = [1, 1]} : vector<2x32xf32> to vector<1x16xf32>
    %255 = vector.broadcast %254 : vector<1x16xf32> to vector<16x16xf32>
    %256 = arith.addf %253, %255 : vector<16x16xf32>
    %c0_70 = arith.constant 0 : index
    %c0_71 = arith.constant 0 : index
    %257 = vector.load %arg9[%c0_70, %c0_71] : memref<16x24xf32, #tpu.memory_space<vmem>>, vector<16x24xf32>
    %cst_72 = arith.constant dense<0.000000e+00> : vector<16x24xf32>
    %258 = tpu.matmul %256, %257, %cst_72 {dimension_numbers = #tpu.dot_dimension_numbers<[1], [0], [0], [1], [0, 0, 1, 1], [], []>} : vector<16x16xf32>, vector<16x24xf32>, vector<16x24xf32> -> vector<16x24xf32>
    %c0_73 = arith.constant 0 : index
    %c0_74 = arith.constant 0 : index
    %259 = vector.load %arg11[%c0_73, %c0_74] : memref<16x24xf32, #tpu.memory_space<vmem>>, vector<16x24xf32>
    tpu.vector_store %arg11[%c0_73, %c0_74], %258 {strides = array<i32>} : memref<16x24xf32, #tpu.memory_space<vmem>>, vector<16x24xf32>,
    return
  }
}

</mosaic_0001>

<bundles_post_ra>
// kernel: tile.13
= control target key start
LH: loop header
LB: loop body
LE: loop exit
PB: predicated region body
PF: predicated region fallthrough
CT: control target
= control target key end

     0   :  { %s154_s0 = inlined_call_operand.vmem [shape: f32[8,8], index: 0, kind: input, shape index: {}]   ;;  %s155_s1 = inlined_call_operand.vmem [shape: f32[2,8,4,8], index: 1, kind: output, shape index: {}]  }
   0x1   :  { %v4_v0 = vld [vmem:[%s154_s0] ss:$0 sm:$0xff]  ;;  %v51_v1 = vld [vmem:[%s154_s0 + $0x1] ss:$0 sm:$0xff]  ;;  %v54_v2 = vld [vmem:[%s154_s0 + $0x2] ss:$0 sm:$0xff] }
   0x2   :  { %5 = vst [vmem:[%s155_s1] sm:$0xf] %v4_v0  ;;  %v57_v3 = vld [vmem:[%s154_s0 + $0x3] ss:$0 sm:$0xff]  ;;  %v60_v4 = vld [vmem:[%s154_s0 + $0x4] ss:$0 sm:$0xff] }
   0x3   :  { %50 = vst [vmem:[%s155_s1 + $0x20] sm:$0xf] %v4_v0  ;;  %v63_v5 = vld [vmem:[%s154_s0 + $0x5] ss:$0 sm:$0xff]  ;;  %v66_v6 = vld [vmem:[%s154_s0 + $0x6] ss:$0 sm:$0xff] }
   0x4   :  { %52 = vst [vmem:[%s155_s1 + $0x4] sm:$0xf] %v51_v1  ;;  %v69_v7 = vld [vmem:[%s154_s0 + $0x7] ss:$0 sm:$0xff] }
   0x5   :  { %53 = vst [vmem:[%s155_s1 + $0x24] sm:$0xf] %v51_v1 }
   0x6   :  { %55 = vst [vmem:[%s155_s1 + $0x8] sm:$0xf] %v54_v2 }
   0x7   :  { %56 = vst [vmem:[%s155_s1 + $0x28] sm:$0xf] %v54_v2 }
   0x8   :  { %58 = vst [vmem:[%s155_s1 + $0xc] sm:$0xf] %v57_v3 }
   0x9   :  { %59 = vst [vmem:[%s155_s1 + $0x2c] sm:$0xf] %v57_v3 }
   0xa   :  { %61 = vst [vmem:[%s155_s1 + $0x10] sm:$0xf] %v60_v4 }
   0xb   :  { %62 = vst [vmem:[%s155_s1 + $0x30] sm:$0xf] %v60_v4 }
   0xc   :  { %64 = vst [vmem:[%s155_s1 + $0x14] sm:$0xf] %v63_v5 }
   0xd   :  { %65 = vst [vmem:[%s155_s1 + $0x34] sm:$0xf] %v63_v5 }
   0xe   :  { %67 = vst [vmem:[%s155_s1 + $0x18] sm:$0xf] %v66_v6 }
   0xf   :  { %68 = vst [vmem:[%s155_s1 + $0x38] sm:$0xf] %v66_v6 }
  0x10   :  { %70 = vst [vmem:[%s155_s1 + $0x1c] sm:$0xf] %v69_v7 }
  0x11   :  { %71 = vst [vmem:[%s155_s1 + $0x3c] sm:$0xf] %v69_v7 }

// kernel: tile.14
= control target key start
LH: loop header
LB: loop body
LE: loop exit
PB: predicated region body
PF: predicated region fallthrough
CT: control target
= control target key end

     0   :  { %vm68_vm0 = vcmask 1047556   ;;  %s167_s9 = smov 16   ;;  %s168_s10 = smov 8   ;;  %vm70_vm1 = vcmask 64512   ;;  %vm89_vm2 = vcmask 261312   ;;  %vm110_vm3 = vcmask 195712   ;;  %s259_s0 = inlined_call_operand.vmem [shape: f32[2,8,4,8], index: 0, kind: input, shape index: {}]   ;;  %s260_s1 = inlined_call_operand.vmem [shape: f32[16,32], index: 1, kind: output, shape index: {}]  }
   0x1   :  { %v152_v0 = vld [vmem:[%s259_s0 + $0x1c] sm:$0xf]  ;;  %v153_v1 = vld [vmem:[%s259_s0 + $0x18] sm:$0xf]  ;;  %v154_v2 = vld [vmem:[%s259_s0 + $0x14] sm:$0xf] }
   0x2   :  { %39 = vst [vmem:[#allocation0 + $0x38] sm:$0xf] %v152_v0  ;;  %v155_v3 = vld [vmem:[%s259_s0 + $0x10] sm:$0xf]  ;;  %v156_v4 = vld [vmem:[%s259_s0 + $0xc] sm:$0xf] }
   0x3   :  { %43 = vst [vmem:[#allocation0 + $0x30] sm:$0xf] %v153_v1  ;;  %v157_v5 = vld [vmem:[%s259_s0 + $0x8] sm:$0xf]  ;;  %v158_v6 = vld [vmem:[%s259_s0 + $0x4] sm:$0xf] }
   0x4   :  { %47 = vst [vmem:[#allocation0 + $0x28] sm:$0xf] %v154_v2  ;;  %v64_v7 = vld [vmem:[%s259_s0] sm:$0xf]  ;;  %v144_v8 = vld [vmem:[%s259_s0 + $0x3c] sm:$0xf] }
   0x5   :  { %51 = vst [vmem:[#allocation0 + $0x20] sm:$0xf] %v155_v3  ;;  %v145_v9 = vld [vmem:[%s259_s0 + $0x38] sm:$0xf]  ;;  %v146_v10 = vld [vmem:[%s259_s0 + $0x34] sm:$0xf] }
   0x6   :  { %55 = vst [vmem:[#allocation0 + $0x18] sm:$0xf] %v156_v4  ;;  %v147_v11 = vld [vmem:[%s259_s0 + $0x30] sm:$0xf]  ;;  %v148_v12 = vld [vmem:[%s259_s0 + $0x2c] sm:$0xf] }
   0x7   :  { %59 = vst [vmem:[#allocation0 + $0x10] sm:$0xf] %v157_v5  ;;  %v149_v13 = vld [vmem:[%s259_s0 + $0x28] sm:$0xf]  ;;  %v150_v15 = vld [vmem:[%s259_s0 + $0x24] sm:$0xf] }
   0x8   :  { %63 = vst [vmem:[#allocation0 + $0x8] sm:$0xf] %v158_v6  ;;  %v151_v17 = vld [vmem:[%s259_s0 + $0x20] sm:$0xf]  ;;  %s166_s0 = smov 24   ;;  %vm131_vm4 = vcmask 130112  }
   0x9   :  { %65 = vst [vmem:[#allocation0] sm:$0xf] %v64_v7 }
   0xa   :  { %7 = vst [vmem:[#allocation0 + $0x78] sm:$0xf] %v144_v8 }
   0xb   :  { %11 = vst [vmem:[#allocation0 + $0x70] sm:$0xf] %v145_v9 }
   0xc   :  { %v84_v14 = vld [vmem:[#allocation0 + $0x3] ss:$8 sm:$0xf0]   ;;  %15 = vst [vmem:[#allocation0 + $0x68] sm:$0xf] %v146_v10 }
   0xd   :  { %v105_v16 = vld [vmem:[#allocation0 + $0x2] ss:$8 sm:$0xf0]   ;;  %19 = vst [vmem:[#allocation0 + $0x60] sm:$0xf] %v147_v11 }
   0xe   :  { %23 = vst [vmem:[#allocation0 + $0x58] sm:$0xf] %v148_v12  ;;  %v126_v18 = vld [vmem:[#allocation0 + $0x1] ss:$8 sm:$0xf0]  }
   0xf   :  { %27 = vst [vmem:[#allocation0 + $0x50] sm:$0xf] %v149_v13  ;;  %v67_v35 = vld [vmem:[#allocation0] ss:$8 sm:$0xf0]  }
  0x10   :  { %v82_v19 = vld [vmem:[#allocation0 + $0x3] ss:$8 sm:$0xf]   ;;  %v103_v20 = vld [vmem:[#allocation0 + $0x2] ss:$8 sm:$0xf]  }
  0x11   :  { %v86_v21 = vsel %vm68_vm0, %v84_v14, %v82_v19  ;;  %v107_v22 = vsel %vm68_vm0, %v105_v16, %v103_v20  ;;  %v124_v23 = vld [vmem:[#allocation0 + $0x1] ss:$8 sm:$0xf]   ;;  %31 = vst [vmem:[#allocation0 + $0x48] sm:$0xf] %v150_v15 }
  0x12   :  { %87 = vrot.lane.b32.xlu0 %v86_v21, %s166_s0  ;;  %108 = vrot.lane.b32.xlu1 %v107_v22, %s167_s9  ;;  %v128_v24 = vsel %vm68_vm0, %v126_v18, %v124_v23  ;;  %35 = vst [vmem:[#allocation0 + $0x40] sm:$0xf] %v151_v17  ;;  %v66_v34 = vld [vmem:[#allocation0] ss:$8 sm:$0xf]  }
  0x13   :  { %129 = vrot.lane.b32.xlu2 %v128_v24, %s168_s10  ;;  %v69_v36 = vsel %vm68_vm0, %v67_v35, %v66_v34 }
  0x14   :  { %v94_v25 = vld [vmem:[#allocation0 + $0x43] ss:$8 sm:$0xf0]   ;;  %v115_v26 = vld [vmem:[#allocation0 + $0x42] ss:$8 sm:$0xf0]  }
  0x15   :  { %v136_v27 = vld [vmem:[#allocation0 + $0x41] ss:$8 sm:$0xf0]   ;;  %71 = vst.msk [vmem:[%s260_s1] sm:$0xff] %vm70_vm1, %v69_v36  }
  0x16   :  { %v75_v38 = vld [vmem:[#allocation0 + $0x40] ss:$8 sm:$0xf0]  }
  0x19   :  { %v92_v28 = vld [vmem:[#allocation0 + $0x43] ss:$8 sm:$0xf]   ;;  %v113_v29 = vld [vmem:[#allocation0 + $0x42] ss:$8 sm:$0xf]  }
  0x1a   :  { %v96_v30 = vsel %vm68_vm0, %v94_v25, %v92_v28  ;;  %v117_v31 = vsel %vm68_vm0, %v115_v26, %v113_v29  ;;  %v134_v32 = vld [vmem:[#allocation0 + $0x41] ss:$8 sm:$0xf]   ;;  %v73_v37 = vld [vmem:[#allocation0 + $0x40] ss:$8 sm:$0xf]  }
  0x1b   :  { %97 = vrot.lane.b32.xlu0 %v96_v30, %s166_s0  ;;  %118 = vrot.lane.b32.xlu1 %v117_v31, %s167_s9  ;;  %v138_v33 = vsel %vm68_vm0, %v136_v27, %v134_v32  ;;  %v77_v40 = vsel %vm68_vm0, %v75_v38, %v73_v37 }
  0x1c   :  { %139 = vrot.lane.b32.xlu2 %v138_v33, %s168_s10  ;;  %159 = vst.msk [vmem:[%s260_s1 + $0x8] sm:$0xff] %vm70_vm1, %v77_v40  }
  0x6d   :  { %v130_v39 = vpop.permute.xlu2 %129  }
  0x76   :  { %v140_v41 = vpop.permute.xlu2 %139  }
  0x84   :  { %v88_v42 = vpop.permute.xlu0 %87   ;;  %v109_v43 = vpop.permute.xlu1 %108  }
  0x85   :  { %90 = vst.msk [vmem:[%s260_s1] sm:$0xff] %vm89_vm2, %v88_v42  }
  0x86   :  { %111 = vst.msk [vmem:[%s260_s1] sm:$0xff] %vm110_vm3, %v109_v43  }
  0x87   :  { %132 = vst.msk [vmem:[%s260_s1] sm:$0xff] %vm131_vm4, %v130_v39  }
  0x8d   :  { %v98_v44 = vpop.permute.xlu0 %97   ;;  %v119_v45 = vpop.permute.xlu1 %118  }
  0x8e   :  { %160 = vst.msk [vmem:[%s260_s1 + $0x8] sm:$0xff] %vm89_vm2, %v98_v44  }
  0x8f   :  { %161 = vst.msk [vmem:[%s260_s1 + $0x8] sm:$0xff] %vm110_vm3, %v119_v45  }
  0x90   :  { %162 = vst.msk [vmem:[%s260_s1 + $0x8] sm:$0xff] %vm131_vm4, %v140_v41  }

// kernel: _lambda_.1
= control target key start
LH: loop header
LB: loop body
LE: loop exit
PB: predicated region body
PF: predicated region fallthrough
CT: control target
= control target key end

     0   :  { %vm50_vm0 = vcmask 261120   ;;  %v2537_v16 = vmov 32.0   ;;  %s2538_s24 = smov 96   ;;  %s2539_s29 = smov 64   ;;  %vm323_vm8 = vcmask 64512   ;;  %vm623_vm9 = vcmask 1043456   ;;  %s3229_s1 = inlined_call_operand.vmem [shape: f32[32,32], index: 1, kind: input, shape index: {}]   ;;  %s3230_s0 = inlined_call_operand.vmem [shape: f32[16,32], index: 0, kind: input, shape index: {}]   ;;  %s3231_s2 = inlined_call_operand.vmem [shape: f32[2,32], index: 2, kind: input, shape index: {}]   ;;  %s3232_s4 = inlined_call_operand.vmem [shape: bf16[2,32,160], index: 4, kind: input, shape index: {}]   ;;  %s3233_s10 = inlined_call_operand.vmem [shape: f32[16,64], index: 10, kind: input, shape index: {}]   ;;  %s3234_s3 = inlined_call_operand.vmem [shape: f32[5,32], index: 3, kind: input, shape index: {}]   ;;  %s3235_s5 = inlined_call_operand.vmem [shape: bf16[2,32,32], index: 5, kind: input, shape index: {}]   ;;  %s3236_s6 = inlined_call_operand.vmem [shape: bf16[2,32,128], index: 6, kind: input, shape index: {}]   ;;  %s3237_s7 = inlined_call_operand.vmem [shape: bf16[2,64,32], index: 7, kind: input, shape index: {}]   ;;  %s3238_s8 = inlined_call_operand.vmem [shape: f32[32,16], index: 8, kind: input, shape index: {}]   ;;  %s3239_s9 = inlined_call_operand.vmem [shape: f32[16,24], index: 9, kind: input, shape index: {}]   ;;  %s3240_s11 = inlined_call_operand.vmem [shape: f32[16,24], index: 11, kind: output, shape index: {}]  }
   0x1   :  { %v48_v0 = vld [vmem:[%s3229_s1 + $0x18] sm:$0xff]  ;;  %v47_v1 = vld [vmem:[%s3229_s1 + $0x10] sm:$0xff]  ;;  %v46_v2 = vld [vmem:[%s3229_s1 + $0x8] sm:$0xff]  ;;  %2430 = vrcp.f32 %v2537_v16  ;;  %s2540_s30 = smov 32   ;;  %s2541_s14 = smov 120   ;;  %vm834_vm10 = vcmask 130048  }
   0x2   :  { %69 = vmatpush.msra.mxu0 %v48_v0  ;;  %2316 = vmatpush.msra.mxu1 %v48_v0  ;;  %v45_v3 = vld [vmem:[%s3229_s1] sm:$0xff]  ;;  %v40_v5 = vld [vmem:[%s3230_s0 + $0x8] sm:$0xff]  ;;  %v2136_v22 = vld [vmem:[%s3232_s4 + $0x10] sm:$0xf]  ;;  %s2542_s15 = smov 104   ;;  %s2543_s16 = smov 112  }
   0x3   :  { %v39_v4 = vld [vmem:[%s3230_s0] sm:$0xff]  ;;  %v2295_v23 = vld [vmem:[%s3232_s4 + $0x14] sm:$0xf0]  ;;  %v2294_v24 = vld [vmem:[%s3232_s4 + $0x14] sm:$0xf]  ;;  %s2544_s17 = smov 8  }
   0x4   :  { %70 = vmatpush.msra.mxu0 %v47_v1  ;;  %2317 = vmatpush.msra.mxu1 %v47_v1  ;;  %v44_v6 = vld [vmem:[%s3231_s2] sm:$0x3]  ;;  %v2137_v25 = vor.u32 %v2295_v23, %v2136_v22  ;;  %v2138_v26 = vld [vmem:[%s3232_s4 + $0x18] sm:$0xf0]  ;;  %v2657_v29 = vld [vmem:[%s3233_s10 + $0x8] sm:$0xff]  ;;  %s2545_s18 = smov 24  }
   0x5   :  { %v49_v7 = vperm.slane %v44_v6, 0  ;;  %v2141_v27 = vor.u32 %v2294_v24, %v2138_v26  ;;  %v2128_v30 = vld [vmem:[%s3232_s4] sm:$0xf]  ;;  %v2293_v31 = vld [vmem:[%s3232_s4 + $0x4] sm:$0xf0]  ;;  %218 = vrot.lane.b32.xlu1 %v2657_v29, %s2538_s24  ;;  %210 = vrot.lane.b32.xlu2 %v2657_v29, %s2540_s30  ;;  %s2546_s19 = smov 16  }
   0x6   :  { %71 = vmatpush.msra.mxu0 %v46_v2  ;;  %2318 = vmatpush.msra.mxu1 %v46_v2  ;;  %v2129_v33 = vor.u32 %v2293_v31, %v2128_v30  ;;  %v2292_v34 = vld [vmem:[%s3232_s4 + $0x4] sm:$0xf]  ;;  %v2130_v35 = vld [vmem:[%s3232_s4 + $0x8] sm:$0xf0]  ;;  %vm837_vm11 = vcmask 195584  }
   0x7   :  { %v2431_v17 = vpop.eup %2430  ;;  %172 = vmatpush.bf16.msra.mxu2 %v2141_v27  ;;  %v2133_v37 = vor.u32 %v2292_v34, %v2130_v35  ;;  %v2681_v39 = vld [vmem:[%s3233_s10] sm:$0xff] }
   0x8   :  { %72 = vmatpush.msra.mxu0 %v45_v3  ;;  %2319 = vmatpush.msra.mxu1 %v45_v3  ;;  %v89_v18 = vmul.f32 32.0, %v2431_v17  ;;  %vm93_vm1 = vweird.f32 %v2431_v17  ;;  %v2693_v55 = vld [vmem:[%s3234_s3] sm:$0x1f] }
   0x9   :  { %2124 = vmatmul.msk.f32.vlgmr.msra.gmra.mxu0 %vm50_vm0, %v39_v4  ;;  %2125 = vmatmul.msk.f32.vlgmr.msra.gmra.mxu1 %vm50_vm0, %v40_v5  ;;  %v121_v58 = vperm.slane %v2693_v55, 0 }
   0xa   :  { %v90_v19 = vsub.f32 1.0, %v89_v18  ;;  %158 = vmatpush.bf16.msrb.mxu1 %v2137_v25 }
   0xb   :  { %173 = vmatpush.bf16.msra.mxu2 %v2133_v37 }
   0xc   :  { %v91_v20 = vmul.f32 %v2431_v17, %v90_v19 }
   0xd   :  { %216 = vrot.lane.b32.xlu1 %v2681_v39, %s2538_s24 }
   0xe   :  { %v92_v21 = vadd.f32 %v2431_v17, %v91_v20  ;;  %159 = vmatpush.bf16.msrb.mxu1 %v2129_v33 }
  0x10   :  { %v2652_v28 = vsel %vm93_vm1, %v2431_v17, %v92_v21 }
  0x15   :  { %208 = vrot.lane.b32.xlu1 %v2681_v39, %s2540_s30 }
  0x1d   :  { %190 = vrot.lane.b32.xlu1 %v2681_v39, %s2539_s29 }
  0x5f   :  { %v2723_v20 = vpop.permute.xlu2 %210 }
  0x77   :  { %v2700_v6 = vpop.permute.xlu1 %218 }
  0x7f   :  { %v2719_v18 = vpop.permute.xlu1 %216 }
  0x86   :  { %v74_v8 = vpop.f32.mrf.mxu0  ;;  %v77_v9 = vpop.f32.mrf.mxu1 }
  0x87   :  { %v2630_v10 = vadd.f32 %v74_v8, %v49_v7  ;;  %v2634_v12 = vadd.f32 %v77_v9, %v49_v7  ;;  %v2729_v24 = vpop.permute.xlu1 %208 }
  0x89   :  { %v80_v11 = vmul.f32 %v2630_v10, %v2630_v10  ;;  %v81_v14 = vmul.f32 %v2634_v12, %v2634_v12 }
  0x8b   :  { %v82_v13 = vsel %vm50_vm0, %v80_v11, 0.0  ;;  %v85_v15 = vsel %vm50_vm0, %v81_v14, 0.0 }
  0x8c   :  { %83 = vadd.xlane.f32.xlu0 %v82_v13 }
  0x8f   :  { %v2736_v30 = vpop.permute.xlu1 %190 }
  0x94   :  { %86 = vadd.xlane.f32.xlu0 %v85_v15 }
  0xa8   :  { %192 = vrot.lane.b32.xlu0 %v2657_v29, %s2539_s29 }
  0xff   :  { %v84_v32 = vpop.xlane.xlu0 %83 }
 0x100   :  { %v95_v36 = vmul.f32 %v2652_v28, %v84_v32 }
 0x102   :  { %v97_v38 = vadd.f32 1e-05, %v95_v36 }
 0x104   :  { %2432 = vrsqrt.f32 %v97_v38  ;;  %vm105_vm3 = vweird.f32 %v97_v38 }
 0x107   :  { %v87_v40 = vpop.xlane.xlu0 %86 }
 0x108   :  { %v96_v41 = vmul.f32 %v2652_v28, %v87_v40 }
 0x10a   :  { %v2433_v42 = vpop.eup %2432  ;;  %v98_v43 = vadd.f32 1e-05, %v96_v41 }
 0x10b   :  { %v100_v44 = vmul.f32 %v2433_v42, %v97_v38  ;;  %vm106_vm2 = vweird.f32 %v2433_v42 }
 0x10c   :  { %2434 = vrsqrt.f32 %v98_v43  ;;  %vm107_vm4 = vmor %vm105_vm3, %vm106_vm2  ;;  %vm115_vm6 = vweird.f32 %v98_v43 }
 0x10d   :  { %v101_v45 = vmul.f32 %v2433_v42, %v100_v44 }
 0x10f   :  { %v102_v46 = vmul.f32 0.5, %v101_v45 }
 0x111   :  { %v103_v47 = vsub.f32 1.5, %v102_v46 }
 0x112   :  { %v2435_v48 = vpop.eup %2434 }
 0x113   :  { %v110_v49 = vmul.f32 %v2435_v48, %v98_v43  ;;  %v104_v50 = vmul.f32 %v2433_v42, %v103_v47  ;;  %vm116_vm5 = vweird.f32 %v2435_v48 }
 0x114   :  { %vm117_vm7 = vmor %vm115_vm6, %vm116_vm5 }
 0x115   :  { %v111_v51 = vmul.f32 %v2435_v48, %v110_v49  ;;  %v108_v53 = vsel %vm107_vm4, %v2433_v42, %v104_v50 }
 0x116   :  { %v119_v57 = vmul.f32 %v108_v53, %v2630_v10 }
 0x117   :  { %v112_v52 = vmul.f32 0.5, %v111_v51 }
 0x118   :  { %v122_v61 = vmul.f32 %v121_v58, %v119_v57 }
 0x119   :  { %v113_v54 = vsub.f32 1.5, %v112_v52 }
 0x11a   :  { %v2702_v7 = vpop.permute.xlu0 %192 }
 0x11b   :  { %v114_v56 = vmul.f32 %v2435_v48, %v113_v54 }
 0x11d   :  { %v118_v59 = vsel %vm117_vm7, %v2435_v48, %v114_v56 }
 0x11e   :  { %v120_v60 = vmul.f32 %v118_v59, %v2634_v12 }
 0x120   :  { %v123_v62 = vmul.f32 %v121_v58, %v120_v60 }
 0x122   :  { %v124_v63 = vpack.c.bf16 %v123_v62, %v122_v61 }
 0x124   :  { %2142 = vmatmul.msk.bf16.vlgmr.msrb.gmra.mxu1 %vm50_vm0, %v124_v63  ;;  %2143 = vmatmul.msk.bf16.vlgmr.msra.gmra.mxu2 %vm50_vm0, %v124_v63 }
 0x1a1   :  { %v161_v0 = vpop.f32.mrf.mxu1 }
 0x1a7   :  { %v175_v1 = vpop.f32.mrf.mxu2 }
 0x1a8   :  { %v180_v2 = vpack.c.bf16 %v175_v1, %v161_v0 }
 0x1a9   :  { %v163_v3 = vpop.f32.mrf.mxu1 }
 0x1aa   :  { %v2706_v11 = vunpack.c.l.bf16 %v180_v2  ;;  %v183_v17 = vunpack.c.h.bf16 %v180_v2 }
 0x1ac   :  { %v222_v19 = vmul.f32 %v2719_v18, %v183_v17  ;;  %v214_v25 = vmul.f32 %v2729_v24, %v2706_v11  ;;  %v196_v31 = vmul.f32 %v2736_v30, %v2706_v11  ;;  %v186_v50 = vmul.f32 %v2706_v11, %v2681_v39 }
 0x1af   :  { %v177_v4 = vpop.f32.mrf.mxu2 }
 0x1b0   :  { %v181_v5 = vpack.c.bf16 %v177_v4, %v163_v3 }
 0x1b2   :  { %v2704_v8 = vunpack.c.l.bf16 %v181_v5  ;;  %v185_v9 = vunpack.c.h.bf16 %v181_v5 }
 0x1b4   :  { %v197_v13 = vmul.f32 %v2702_v7, %v2704_v8  ;;  %v223_v14 = vmul.f32 %v2700_v6, %v185_v9  ;;  %v2713_v15 = vpack.i.bf16 %v2706_v11, %v2704_v8  ;;  %v2335_v16 = vpack.i.bf16 %v2704_v8, %v2706_v11 }
 0x1b5   :  { %v215_v21 = vmul.f32 %v2723_v20, %v2704_v8  ;;  %v187_v34 = vmul.f32 %v2704_v8, %v2657_v29 }
 0x1b6   :  { %228 = vrot.lane.b32.xlu2 %v223_v14, %s2540_s30  ;;  %202 = vrot.lane.b32.xlu1 %v197_v13, %s2540_s30 }
 0x1be   :  { %226 = vrot.lane.b32.xlu2 %v222_v19, %s2540_s30  ;;  %v310_v19 = vpack.c.bf16 %v2706_v11, %v2706_v11 }
 0x210   :  { %v229_v22 = vpop.permute.xlu2 %228 }
 0x211   :  { %v233_v23 = vadd.f32 %v229_v22, %v215_v21  ;;  %v616_v21 = vunpack.c.l.b16 %v310_v19 }
 0x213   :  { %266 = vrot.lane.b32.xlu2 %v233_v23, %s2541_s14  ;;  %278 = vrot.lane.b32.xlu1 %v233_v23, %s2542_s15  ;;  %v283_v38 = vpack.c.bf16 %v233_v23, %v233_v23  ;;  %v617_v22 = vpack.c.b16 %v616_v21, %v616_v21 }
 0x215   :  { %v344_v40 = vunpack.c.l.b16 %v283_v38 }
 0x217   :  { %v345_v41 = vpack.c.b16 %v344_v40, %v344_v40 }
 0x218   :  { %v227_v26 = vpop.permute.xlu2 %226 }
 0x219   :  { %v232_v27 = vadd.f32 %v227_v26, %v214_v25 }
 0x21b   :  { %270 = vrot.lane.b32.xlu0 %v232_v27, %s2543_s16  ;;  %264 = vrot.lane.b32.xlu2 %v232_v27, %s2541_s14  ;;  %v282_v32 = vpack.c.bf16 %v232_v27, %v232_v27 }
 0x21c   :  { %276 = vrot.lane.b32.xlu1 %v232_v27, %s2542_s15 }
 0x21d   :  { %v319_v33 = vunpack.c.l.b16 %v282_v32 }
 0x21f   :  { %v320_v37 = vpack.c.b16 %v319_v33, %v319_v33 }
 0x223   :  { %272 = vrot.lane.b32.xlu0 %v233_v23, %s2543_s16  ;;  %200 = vrot.lane.b32.xlu2 %v196_v31, %s2540_s30 }
 0x228   :  { %v203_v35 = vpop.permute.xlu1 %202 }
 0x229   :  { %v207_v36 = vadd.f32 %v203_v35, %v187_v34 }
 0x22b   :  { %321 = vrot.lane.b32.xlu2 %v320_v37, %s2538_s24  ;;  %238 = vrot.lane.b32.xlu1 %v207_v36, %s2541_s14  ;;  %v255_v1 = vpack.c.bf16 %v207_v36, %v207_v36 }
 0x233   :  { %346 = vrot.lane.b32.xlu2 %v345_v41, %s2538_s24 }
 0x26d   :  { %v267_v42 = vpop.permute.xlu2 %266 }
 0x26e   :  { %v285_v43 = vpack.c.bf16 %v267_v42, %v267_v42 }
 0x270   :  { %v392_v44 = vunpack.c.l.b16 %v285_v43 }
 0x272   :  { %v393_v45 = vpack.c.b16 %v392_v44, %v392_v44 }
 0x274   :  { %394 = vrot.lane.b32.xlu0 %v393_v45, %s2538_s24 }
 0x275   :  { %v265_v46 = vpop.permute.xlu2 %264 }
 0x276   :  { %v284_v29 = vpack.c.bf16 %v265_v46, %v265_v46 }
 0x278   :  { %v368_v47 = vunpack.c.l.b16 %v284_v29 }
 0x27a   :  { %v369_v48 = vpack.c.b16 %v368_v47, %v368_v47 }
 0x27c   :  { %370 = vrot.lane.b32.xlu0 %v369_v48, %s2538_s24 }
 0x27d   :  { %v201_v49 = vpop.permute.xlu2 %200 }
 0x27e   :  { %v206_v51 = vadd.f32 %v201_v49, %v186_v50 }
 0x280   :  { %v254_v59 = vpack.c.bf16 %v206_v51, %v206_v51 }
 0x284   :  { %236 = vrot.lane.b32.xlu0 %v206_v51, %s2541_s14 }
 0x285   :  { %v322_v52 = vpop.permute.xlu2 %321  ;;  %v279_v53 = vpop.permute.xlu1 %278 }
 0x286   :  { %v289_v54 = vpack.c.bf16 %v279_v53, %v279_v53  ;;  %v328_v56 = vsel %vm323_vm8, %v322_v52, 0 }
 0x287   :  { %337 = vmatpush.bf16.xpose.msra.mxu3 %v328_v56 }
 0x288   :  { %v488_v57 = vunpack.c.l.b16 %v289_v54 }
 0x28a   :  { %v489_v58 = vpack.c.b16 %v488_v57, %v488_v57 }
 0x28c   :  { %490 = vrot.lane.b32.xlu2 %v489_v58, %s2538_s24 }
 0x28d   :  { %v347_v60 = vpop.permute.xlu2 %346  ;;  %v271_v61 = vpop.permute.xlu0 %270 }
 0x28e   :  { %v286_v62 = vpack.c.bf16 %v271_v61, %v271_v61  ;;  %2144 = vmatmul.msk.bf16.vlgmr.msra.gmra.mxu3 %vm323_vm8, %v254_v59  ;;  %v352_v39 = vsel %vm323_vm8, %v347_v60, 0  ;;  %v277_v4 = vpop.permute.xlu1 %276 }
 0x28f   :  { %361 = vmatpush.bf16.xpose.msrb.mxu0 %v352_v39  ;;  %v288_v9 = vpack.c.bf16 %v277_v4, %v277_v4 }
 0x290   :  { %v416_v63 = vunpack.c.l.b16 %v286_v62 }
 0x291   :  { %v464_v14 = vunpack.c.l.b16 %v288_v9 }
 0x292   :  { %v417_v0 = vpack.c.b16 %v416_v63, %v416_v63 }
 0x293   :  { %v465_v17 = vpack.c.b16 %v464_v14, %v464_v14 }
 0x294   :  { %250 = vrot.lane.b32.xlu2 %v207_v36, %s2542_s15  ;;  %418 = vrot.lane.b32.xlu1 %v417_v0, %s2538_s24 }
 0x295   :  { %v273_v2 = vpop.permute.xlu0 %272 }
 0x296   :  { %v287_v3 = vpack.c.bf16 %v273_v2, %v273_v2  ;;  %2145 = vmatmul.msk.bf16.vlgmr.msrb.gmra.mxu0 %vm323_vm8, %v255_v1 }
 0x298   :  { %v440_v5 = vunpack.c.l.b16 %v287_v3 }
 0x29a   :  { %v441_v13 = vpack.c.b16 %v440_v5, %v440_v5 }
 0x29c   :  { %244 = vrot.lane.b32.xlu2 %v207_v36, %s2543_s16  ;;  %242 = vrot.lane.b32.xlu1 %v206_v51, %s2543_s16 }
 0x29d   :  { %442 = vrot.lane.b32.xlu0 %v441_v13, %s2538_s24  ;;  %v239_v31 = vpop.permute.xlu1 %238 }
 0x29e   :  { %v257_v32 = vpack.c.bf16 %v239_v31, %v239_v31 }
 0x2a4   :  { %2341 = vrot.lane.b32.xlu2 %v2713_v15, %s2542_s15  ;;  %466 = vrot.lane.b32.xlu1 %v465_v17, %s2538_s24 }
 0x2a5   :  { %248 = vrot.lane.b32.xlu0 %v206_v51, %s2542_s15 }
 0x2ac   :  { %2331 = vrot.lane.b32.xlu1 %v2713_v15, %s2541_s14 }
 0x2ad   :  { %2336 = vrot.lane.b32.xlu0 %v2335_v16, %s2543_s16 }
 0x2b4   :  { %618 = vrot.lane.b32.xlu1 %v617_v22, %s2539_s29 }
 0x2e6   :  { %v491_v23 = vpop.permute.xlu2 %490  ;;  %v395_v25 = vpop.permute.xlu0 %394 }
 0x2e7   :  { %v496_v26 = vsel %vm323_vm8, %v491_v23, 0  ;;  %v400_v27 = vsel %vm323_vm8, %v395_v25, 0 }
 0x2e8   :  { %409 = vmatpush.bf16.xpose.msrb.mxu2 %v400_v27 }
 0x2ee   :  { %v371_v15 = vpop.permute.xlu0 %370  ;;  %v251_v34 = vpop.permute.xlu2 %250 }
 0x2ef   :  { %v376_v33 = vsel %vm323_vm8, %v371_v15, 0  ;;  %2147 = vmatmul.msk.bf16.vlgmr.msrb.gmra.mxu2 %vm323_vm8, %v257_v32  ;;  %v261_v35 = vpack.c.bf16 %v251_v34, %v251_v34 }
 0x2f0   :  { %505 = vmatpush.bf16.xpose.msra.mxu2 %v496_v26  ;;  %385 = vmatpush.bf16.xpose.msra.mxu1 %v376_v33 }
 0x2f6   :  { %v237_v11 = vpop.permute.xlu0 %236  ;;  %v245_v45 = vpop.permute.xlu2 %244 }
 0x2f7   :  { %v256_v16 = vpack.c.bf16 %v237_v11, %v237_v11  ;;  %v259_v47 = vpack.c.bf16 %v245_v45, %v245_v45 }
 0x2f9   :  { %2146 = vmatmul.msk.bf16.vlgmr.msra.gmra.mxu1 %vm323_vm8, %v256_v16 }
 0x2ff   :  { %2151 = vmatmul.msk.bf16.vlgmr.msra.gmra.mxu2 %vm323_vm8, %v261_v35 }
 0x306   :  { %v419_v36 = vpop.permute.xlu1 %418 }
 0x307   :  { %v424_v37 = vsel %vm323_vm8, %v419_v36, 0 }
 0x308   :  { %433 = vmatpush.bf16.xpose.msrb.mxu3 %v424_v37 }
 0x30e   :  { %v243_v38 = vpop.permute.xlu1 %242 }
 0x30f   :  { %v258_v40 = vpack.c.bf16 %v243_v38, %v243_v38  ;;  %v443_v41 = vpop.permute.xlu0 %442 }
 0x310   :  { %v448_v42 = vsel %vm323_vm8, %v443_v41, 0 }
 0x311   :  { %457 = vmatpush.bf16.xpose.msra.mxu0 %v448_v42  ;;  %v339_v43 = vpop.f32.mrf.mxu3  ;;  %2148 = vmatmul.msk.bf16.vlgmr.msrb.gmra.mxu3 %vm323_vm8, %v258_v40 }
 0x312   :  { %v511_v44 = vmul.f32 0.35355338, %v339_v43 }
 0x313   :  { %v363_v46 = vpop.f32.mrf.mxu0 }
 0x314   :  { %v519_v29 = vsel %vm323_vm8, %v511_v44, -inf  ;;  %v512_v62 = vmul.f32 0.35355338, %v363_v46 }
 0x315   :  { %520 = vmax.xlane.f32.xlu1 %v519_v29 }
 0x316   :  { %v467_v48 = vpop.permute.xlu1 %466  ;;  %v522_v39 = vsel %vm323_vm8, %v512_v62, -inf }
 0x317   :  { %v472_v49 = vsel %vm323_vm8, %v467_v48, 0  ;;  %v249_v51 = vpop.permute.xlu0 %248 }
 0x318   :  { %2149 = vmatmul.msk.bf16.vlgmr.msra.gmra.mxu0 %vm323_vm8, %v259_v47  ;;  %481 = vmatpush.bf16.xpose.msrb.mxu1 %v472_v49  ;;  %v260_v53 = vpack.c.bf16 %v249_v51, %v249_v51  ;;  %v2342_v51 = vpop.permute.xlu2 %2341 }
 0x319   :  { %v341_v50 = vpop.f32.mrf.mxu3 }
 0x31b   :  { %v365_v52 = vpop.f32.mrf.mxu0 }
 0x31c   :  { %v311_v52 = vpack.c.bf16 %v2704_v8, %v2704_v8 }
 0x31e   :  { %v2332_v54 = vpop.permute.xlu1 %2331 }
 0x31f   :  { %v2333_v56 = vunpack.i.l.bf16 %v2332_v54  ;;  %2150 = vmatmul.msk.bf16.vlgmr.msrb.gmra.mxu1 %vm323_vm8, %v260_v53  ;;  %v2796_v22 = vpop.permute.xlu0 %2336  ;;  %v2334_v40 = vunpack.i.h.bf16 %v2332_v54  ;;  %v641_v53 = vunpack.c.l.b16 %v311_v52 }
 0x321   :  { %v313_v57 = vpack.c.bf16 %v2333_v56, %v2333_v56  ;;  %v312_v41 = vpack.c.bf16 %v2334_v40, %v2334_v40 }
 0x323   :  { %v689_v58 = vunpack.c.l.b16 %v313_v57  ;;  %v665_v43 = vunpack.c.l.b16 %v312_v41  ;;  %v642_v57 = vpack.c.b16 %v641_v53, %v641_v53 }
 0x325   :  { %v690_v59 = vpack.c.b16 %v689_v58, %v689_v58 }
 0x326   :  { %v619_v60 = vpop.permute.xlu1 %618 }
 0x327   :  { %v625_v61 = vsel %vm623_vm9, %v619_v60, 0  ;;  %691 = vrot.lane.b32.xlu0 %v690_v59, %s2539_s29 }
 0x328   :  { %634 = vmatpush.bf16.msra.mxu3 %v625_v61 }
 0x351   :  { %523 = vmax.xlane.f32.xlu0 %v522_v39 }
 0x372   :  { %v411_v63 = vpop.f32.mrf.mxu2 }
 0x373   :  { %v2792_v4 = vmul.f32 0.35355338, %v411_v63 }
 0x375   :  { %v528_v9 = vsel %vm323_vm8, %v2792_v4, -inf }
 0x376   :  { %v387_v0 = vpop.f32.mrf.mxu1 }
 0x377   :  { %v513_v1 = vmul.f32 0.35355338, %v387_v0 }
 0x379   :  { %v525_v2 = vsel %vm323_vm8, %v513_v1, -inf }
 0x37a   :  { %v413_v3 = vpop.f32.mrf.mxu2  ;;  %526 = vmax.xlane.f32.xlu2 %v525_v2 }
 0x37e   :  { %v389_v5 = vpop.f32.mrf.mxu1 }
 0x382   :  { %v507_v13 = vpop.f32.mrf.mxu2  ;;  %529 = vmax.xlane.f32.xlu2 %v528_v9 }
 0x383   :  { %v2808_v49 = vmul.f32 0.35355338, %v507_v13 }
 0x385   :  { %v540_v50 = vsel %vm323_vm8, %v2808_v49, -inf }
 0x388   :  { %v521_v14 = vpop.xlane.xlu1 %520 }
 0x389   :  { %v543_v17 = vsub.f32 %v511_v44, %v521_v14  ;;  %v666_v44 = vpack.c.b16 %v665_v43, %v665_v43 }
 0x38a   :  { %v509_v19 = vpop.f32.mrf.mxu2 }
 0x38b   :  { %v551_v21 = vmul.f32 1.442695, %v543_v17 }
 0x38d   :  { %2436 = vpow2.f32 %v551_v21 }
 0x393   :  { %v2437_v23 = vpop.eup %2436 }
 0x394   :  { %v435_v25 = vpop.f32.mrf.mxu3  ;;  %v567_v26 = vsel %vm323_vm8, %v2437_v23, 0.0 }
 0x395   :  { %v515_v27 = vmul.f32 0.35355338, %v435_v25  ;;  %v459_v31 = vpop.f32.mrf.mxu0  ;;  %568 = vadd.xlane.f32.xlu1 %v567_v26 }
 0x396   :  { %v516_v11 = vmul.f32 0.35355338, %v459_v31 }
 0x397   :  { %v531_v32 = vsel %vm323_vm8, %v515_v27, -inf }
 0x398   :  { %532 = vmax.xlane.f32.xlu0 %v531_v32  ;;  %v534_v37 = vsel %vm323_vm8, %v516_v11, -inf }
 0x399   :  { %v692_v15 = vpop.permute.xlu0 %691 }
 0x39a   :  { %v697_v33 = vsel %vm623_vm9, %v692_v15, 0 }
 0x39b   :  { %706 = vmatpush.bf16.msrb.mxu2 %v697_v33 }
 0x39c   :  { %v437_v16 = vpop.f32.mrf.mxu3  ;;  %v483_v34 = vpop.f32.mrf.mxu1 }
 0x39d   :  { %v461_v35 = vpop.f32.mrf.mxu0  ;;  %v517_v36 = vmul.f32 0.35355338, %v483_v34  ;;  %v2339_v16 = vunpack.i.h.bf16 %v2796_v22  ;;  %v2343_v34 = vunpack.i.l.bf16 %v2342_v51 }
 0x39f   :  { %v537_v38 = vsel %vm323_vm8, %v517_v36, -inf  ;;  %v315_v35 = vpack.c.bf16 %v2339_v16, %v2339_v16 }
 0x3a0   :  { %535 = vmax.xlane.f32.xlu0 %v534_v37  ;;  %538 = vmax.xlane.f32.xlu2 %v537_v38  ;;  %v2344_v38 = vunpack.i.h.bf16 %v2342_v51 }
 0x3a1   :  { %v737_v37 = vunpack.c.l.b16 %v315_v35 }
 0x3a3   :  { %v738_v41 = vpack.c.b16 %v737_v37, %v737_v37 }
 0x3a4   :  { %v485_v42 = vpop.f32.mrf.mxu1 }
 0x3a5   :  { %v316_v42 = vpack.c.bf16 %v2344_v38, %v2344_v38 }
 0x3ae   :  { %667 = vrot.lane.b32.xlu1 %v666_v44, %s2539_s29  ;;  %v761_v44 = vunpack.c.l.b16 %v316_v42 }
 0x3c4   :  { %v524_v45 = vpop.xlane.xlu0 %523 }
 0x3c5   :  { %v544_v46 = vsub.f32 %v512_v62, %v524_v45  ;;  %v762_v45 = vpack.c.b16 %v761_v44, %v761_v44 }
 0x3c7   :  { %v553_v29 = vmul.f32 1.442695, %v544_v46 }
 0x3c9   :  { %2438 = vpow2.f32 %v553_v29 }
 0x3cf   :  { %v2804_v47 = vpop.eup %2438 }
 0x3d0   :  { %v570_v48 = vsel %vm323_vm8, %v2804_v47, 0.0 }
 0x3d1   :  { %571 = vadd.xlane.f32.xlu2 %v570_v48 }
 0x3d9   :  { %541 = vmax.xlane.f32.xlu2 %v540_v50 }
 0x3ed   :  { %v527_v54 = vpop.xlane.xlu2 %526 }
 0x3ee   :  { %v545_v56 = vsub.f32 %v513_v1, %v527_v54 }
 0x3f0   :  { %v555_v58 = vmul.f32 1.442695, %v545_v56 }
 0x3f1   :  { %643 = vrot.lane.b32.xlu2 %v642_v57, %s2539_s29 }
 0x3f2   :  { %2440 = vpow2.f32 %v555_v58 }
 0x3f5   :  { %v530_v62 = vpop.xlane.xlu2 %529 }
 0x3f6   :  { %v546_v8 = vsub.f32 %v2792_v4, %v530_v62 }
 0x3f8   :  { %v2815_v59 = vpop.eup %2440  ;;  %v557_v3 = vmul.f32 1.442695, %v546_v8 }
 0x3f9   :  { %v573_v60 = vsel %vm323_vm8, %v2815_v59, 0.0 }
 0x3fa   :  { %574 = vadd.xlane.f32.xlu1 %v573_v60  ;;  %v2338_v60 = vunpack.i.l.bf16 %v2796_v22 }
 0x408   :  { %v569_v61 = vpop.xlane.xlu1 %568 }
 0x409   :  { %2442 = vrcp.f32 %v569_v61  ;;  %v314_v61 = vpack.c.bf16 %v2338_v60, %v2338_v60 }
 0x40b   :  { %v533_v39 = vpop.xlane.xlu0 %532 }
 0x40c   :  { %v547_v63 = vsub.f32 %v515_v27, %v533_v39 }
 0x40e   :  { %v559_v0 = vmul.f32 1.442695, %v547_v63 }
 0x40f   :  { %v2443_v1 = vpop.eup %2442 }
 0x410   :  { %v599_v2 = vmul.f32 %v2443_v1, %v2437_v23  ;;  %2444 = vpow2.f32 %v559_v0 }
 0x411   :  { %2446 = vpow2.f32 %v557_v3 }
 0x412   :  { %v607_v5 = vpack.c.bf16 %v599_v2, %v599_v2 }
 0x413   :  { %v539_v9 = vpop.xlane.xlu2 %538  ;;  %v536_v13 = vpop.xlane.xlu0 %535 }
 0x414   :  { %v548_v14 = vsub.f32 %v516_v11, %v536_v13  ;;  %2152 = vmatmul.msk.bf16.vlgmr.msra.gmra.mxu3 %vm323_vm8, %v607_v5  ;;  %v549_v19 = vsub.f32 %v517_v36, %v539_v9  ;;  %v317_v36 = vpack.c.bf16 %v2343_v34, %v2343_v34 }
 0x416   :  { %v2821_v17 = vpop.eup %2444  ;;  %v561_v21 = vmul.f32 1.442695, %v548_v14  ;;  %v563_v4 = vmul.f32 1.442695, %v549_v19  ;;  %v785_v40 = vunpack.c.l.b16 %v317_v36 }
 0x417   :  { %v579_v25 = vsel %vm323_vm8, %v2821_v17, 0.0  ;;  %v2825_v23 = vpop.eup %2446 }
 0x418   :  { %580 = vadd.xlane.f32.xlu0 %v579_v25  ;;  %2448 = vpow2.f32 %v561_v21  ;;  %v576_v27 = vsel %vm323_vm8, %v2825_v23, 0.0  ;;  %v786_v43 = vpack.c.b16 %v785_v40, %v785_v40 }
 0x419   :  { %2450 = vpow2.f32 %v563_v4 }
 0x41e   :  { %v2449_v26 = vpop.eup %2448 }
 0x41f   :  { %v582_v32 = vsel %vm323_vm8, %v2449_v26, 0.0  ;;  %v2831_v33 = vpop.eup %2450 }
 0x420   :  { %v668_v31 = vpop.permute.xlu1 %667  ;;  %577 = vadd.xlane.f32.xlu0 %v576_v27  ;;  %583 = vadd.xlane.f32.xlu2 %v582_v32  ;;  %v585_v11 = vsel %vm323_vm8, %v2831_v33, 0.0 }
 0x421   :  { %v673_v15 = vsel %vm623_vm9, %v668_v31, 0 }
 0x422   :  { %682 = vmatpush.bf16.msra.mxu1 %v673_v15 }
 0x428   :  { %586 = vadd.xlane.f32.xlu0 %v585_v11 }
 0x438   :  { %739 = vrot.lane.b32.xlu2 %v738_v41, %s2539_s29 }
 0x43c   :  { %787 = vrot.lane.b32.xlu0 %v786_v43, %s2539_s29 }
 0x444   :  { %v572_v46 = vpop.xlane.xlu2 %571  ;;  %763 = vrot.lane.b32.xlu0 %v762_v45, %s2539_s29 }
 0x445   :  { %2452 = vrcp.f32 %v572_v46 }
 0x44b   :  { %v2453_v52 = vpop.eup %2452 }
 0x44c   :  { %v542_v29 = vpop.xlane.xlu2 %541  ;;  %v600_v51 = vmul.f32 %v2453_v52, %v2804_v47 }
 0x44d   :  { %v550_v48 = vsub.f32 %v2808_v49, %v542_v29  ;;  %v713_v49 = vunpack.c.l.b16 %v314_v61  ;;  %v2297_v61 = vld [vmem:[%s3235_s5 + $0x8] sm:$0xff] }
 0x44e   :  { %v608_v57 = vpack.c.bf16 %v600_v51, %v600_v51 }
 0x44f   :  { %v565_v50 = vmul.f32 1.442695, %v550_v48  ;;  %v714_v39 = vpack.c.b16 %v713_v49, %v713_v49  ;;  %v2296_v49 = vld [vmem:[%s3235_s5] sm:$0xff] }
 0x451   :  { %2454 = vpow2.f32 %v565_v50 }
 0x454   :  { %v644_v53 = vpop.permute.xlu2 %643 }
 0x455   :  { %v649_v54 = vsel %vm623_vm9, %v644_v53, 0 }
 0x456   :  { %658 = vmatpush.bf16.msrb.mxu0 %v649_v54 }
 0x457   :  { %v2455_v56 = vpop.eup %2454 }
 0x458   :  { %v588_v58 = vsel %vm323_vm8, %v2455_v56, 0.0 }
 0x459   :  { %589 = vadd.xlane.f32.xlu1 %v588_v58  ;;  %2153 = vmatmul.msk.bf16.vlgmr.msrb.gmra.mxu0 %vm323_vm8, %v608_v57 }
 0x46d   :  { %v575_v62 = vpop.xlane.xlu1 %574 }
 0x46e   :  { %2456 = vrcp.f32 %v575_v62 }
 0x472   :  { %715 = vrot.lane.b32.xlu1 %v714_v39, %s2539_s29 }
 0x474   :  { %v2457_v47 = vpop.eup %2456 }
 0x475   :  { %v601_v63 = vmul.f32 %v2457_v47, %v2815_v59 }
 0x477   :  { %v609_v8 = vpack.c.bf16 %v601_v63, %v601_v63 }
 0x479   :  { %2154 = vmatmul.msk.bf16.vlgmr.msra.gmra.mxu1 %vm323_vm8, %v609_v8 }
 0x48b   :  { %v581_v0 = vpop.xlane.xlu0 %580 }
 0x493   :  { %v578_v1 = vpop.xlane.xlu0 %577  ;;  %v584_v2 = vpop.xlane.xlu2 %583 }
 0x494   :  { %2458 = vrcp.f32 %v578_v1 }
 0x495   :  { %2460 = vrcp.f32 %v584_v2 }
 0x497   :  { %v2848_v3 = vpop.f32.mrf.mxu3 }
 0x49a   :  { %v2459_v22 = vpop.eup %2458 }
 0x49b   :  { %v2461_v5 = vpop.eup %2460  ;;  %v602_v9 = vmul.f32 %v2459_v22, %v2825_v23  ;;  %v740_v14 = vpop.permute.xlu2 %739 }
 0x49c   :  { %v604_v13 = vmul.f32 %v2461_v5, %v2449_v26  ;;  %v745_v21 = vsel %vm623_vm9, %v740_v14, 0  ;;  %v587_v4 = vpop.xlane.xlu0 %586 }
 0x49d   :  { %v610_v19 = vpack.c.bf16 %v602_v9, %v602_v9  ;;  %754 = vmatpush.bf16.msra.mxu0 %v745_v21  ;;  %2462 = vrcp.f32 %v587_v4 }
 0x49e   :  { %v612_v59 = vpack.c.bf16 %v604_v13, %v604_v13 }
 0x49f   :  { %v638_v25 = vpop.f32.mrf.mxu3  ;;  %2155 = vmatmul.msk.bf16.vlgmr.msrb.gmra.mxu2 %vm323_vm8, %v610_v19 }
 0x4a0   :  { %2157 = vmatmul.msk.bf16.vlgmr.msra.gmra.mxu0 %vm323_vm8, %v612_v59 }
 0x4a3   :  { %v2463_v32 = vpop.eup %2462 }
 0x4a4   :  { %v605_v23 = vmul.f32 %v2463_v32, %v2831_v33 }
 0x4a6   :  { %v613_v11 = vpack.c.bf16 %v605_v23, %v605_v23 }
 0x4ae   :  { %v788_v27 = vpop.permute.xlu0 %787 }
 0x4af   :  { %v793_v31 = vsel %vm623_vm9, %v788_v27, 0 }
 0x4b0   :  { %802 = vmatpush.bf16.msra.mxu2 %v793_v31 }
 0x4b6   :  { %v764_v26 = vpop.permute.xlu0 %763 }
 0x4b7   :  { %v769_v15 = vsel %vm623_vm9, %v764_v26, 0 }
 0x4b8   :  { %778 = vmatpush.bf16.msrb.mxu1 %v769_v15 }
 0x4bb   :  { %2158 = vmatmul.msk.bf16.vlgmr.msrb.gmra.mxu1 %vm323_vm8, %v613_v11 }
 0x4cc   :  { %v590_v16 = vpop.xlane.xlu1 %589 }
 0x4cd   :  { %2464 = vrcp.f32 %v590_v16 }
 0x4ce   :  { %2466 = vrcp.f32 %v581_v0 }
 0x4d3   :  { %v2465_v34 = vpop.eup %2464 }
 0x4d4   :  { %v606_v35 = vmul.f32 %v2465_v34, %v2455_v56  ;;  %v2467_v40 = vpop.eup %2466 }
 0x4d5   :  { %v603_v33 = vmul.f32 %v2467_v40, %v2821_v17 }
 0x4d6   :  { %v614_v36 = vpack.c.bf16 %v606_v35, %v606_v35  ;;  %v660_v37 = vpop.f32.mrf.mxu0 }
 0x4d7   :  { %v611_v43 = vpack.c.bf16 %v603_v33, %v603_v33 }
 0x4d8   :  { %2159 = vmatmul.msk.bf16.vlgmr.msra.gmra.mxu2 %vm323_vm8, %v614_v36 }
 0x4de   :  { %v662_v38 = vpop.f32.mrf.mxu0 }
 0x4e4   :  { %v716_v41 = vpop.permute.xlu1 %715 }
 0x4e5   :  { %v721_v42 = vsel %vm623_vm9, %v716_v41, 0 }
 0x4e6   :  { %730 = vmatpush.bf16.msrb.mxu3 %v721_v42 }
 0x4e9   :  { %2156 = vmatmul.msk.bf16.vlgmr.msrb.gmra.mxu3 %vm323_vm8, %v611_v43 }
 0x4ea   :  { %866 = vmatpush.bf16.msra.mxu3 %v2297_v61 }
 0x4ee   :  { %867 = vmatpush.bf16.msra.mxu3 %v2296_v49 }
 0x4f6   :  { %v684_v44 = vpop.f32.mrf.mxu1 }
 0x4fe   :  { %v686_v45 = vpop.f32.mrf.mxu1 }
 0x51d   :  { %v756_v46 = vpop.f32.mrf.mxu0 }
 0x522   :  { %v708_v29 = vpop.f32.mrf.mxu2 }
 0x523   :  { %v2345_v48 = vpack.i.bf16 %v708_v29, %v684_v44 }
 0x525   :  { %2346 = vrot.lane.b32.xlu1 %v2345_v48, %s2544_s17  ;;  %v758_v50 = vpop.f32.mrf.mxu0 }
 0x52a   :  { %v710_v52 = vpop.f32.mrf.mxu2 }
 0x538   :  { %v780_v51 = vpop.f32.mrf.mxu1 }
 0x540   :  { %v782_v53 = vpop.f32.mrf.mxu1 }
 0x55b   :  { %v804_v17 = vpop.f32.mrf.mxu2 }
 0x55c   :  { %v2355_v54 = vpack.i.bf16 %v804_v17, %v780_v51 }
 0x55e   :  { %2356 = vrot.lane.b32.xlu0 %v2355_v54, %s2545_s18  ;;  %v914_v54 = vperm.slane %v2693_v55, 2 }
 0x563   :  { %v806_v56 = vpop.f32.mrf.mxu2 }
 0x56c   :  { %v732_v57 = vpop.f32.mrf.mxu3 }
 0x56d   :  { %v2350_v58 = vpack.i.bf16 %v756_v46, %v732_v57 }
 0x56f   :  { %2351 = vrot.lane.b32.xlu2 %v2350_v58, %s2546_s19 }
 0x574   :  { %v734_v60 = vpop.f32.mrf.mxu3 }
 0x597   :  { %v2347_v62 = vpop.permute.xlu1 %2346 }
 0x598   :  { %v2349_v47 = vunpack.i.h.bf16 %v2347_v62  ;;  %v2348_v63 = vunpack.i.l.bf16 %v2347_v62 }
 0x59a   :  { %v833_v2 = vsel %vm323_vm8, %v660_v37, %v2349_v47  ;;  %v832_v22 = vsel %vm323_vm8, %v2848_v3, %v2348_v63  ;;  %v2298_v37 = vld [vmem:[%s3236_s6] sm:$0xff] }
 0x5c9   :  { %v2352_v39 = vpop.permute.xlu2 %2351 }
 0x5ca   :  { %v2354_v8 = vunpack.i.h.bf16 %v2352_v39  ;;  %v2353_v0 = vunpack.i.l.bf16 %v2352_v39 }
 0x5cc   :  { %v835_v13 = vsel %vm834_vm10, %v832_v22, %v2353_v0  ;;  %v836_v14 = vsel %vm834_vm10, %v833_v2, %v2354_v8  ;;  %v2303_v8 = vld [vmem:[%s3237_s7 + $0x18] sm:$0xff]  ;;  %v2301_v22 = vld [vmem:[%s3237_s7 + $0x8] sm:$0xff] }
 0x5cd   :  { %1046 = vmatpush.bf16.msra.mxu1 %v2303_v8  ;;  %v2213_v8 = vld [vmem:[%s3232_s4 + $0x38] sm:$0xf0] }
 0x5d0   :  { %v2357_v1 = vpop.permute.xlu0 %2356 }
 0x5d1   :  { %v2359_v5 = vunpack.i.h.bf16 %v2357_v1  ;;  %v2358_v9 = vunpack.i.l.bf16 %v2357_v1  ;;  %v2302_v1 = vld [vmem:[%s3237_s7 + $0x10] sm:$0xff] }
 0x5d2   :  { %1047 = vmatpush.bf16.msra.mxu1 %v2302_v1  ;;  %v2203_v1 = vld [vmem:[%s3232_s4 + $0x20] sm:$0xf] }
 0x5d3   :  { %v838_v19 = vsel %vm837_vm11, %v835_v13, %v2358_v9  ;;  %v839_v21 = vsel %vm837_vm11, %v836_v14, %v2359_v5 }
 0x5d4   :  { %v840_v59 = vpack.c.bf16 %v839_v21, %v838_v19 }
 0x5d6   :  { %2168 = vmatmul.msk.bf16.vlgmr.msra.gmra.mxu3 %vm50_vm0, %v840_v59  ;;  %1048 = vmatpush.bf16.msra.mxu1 %v2301_v22  ;;  %v2300_v59 = vld [vmem:[%s3237_s7] sm:$0xff] }
 0x5d7   :  { %v2304_v22 = vld [vmem:[%s3232_s4 + $0x24] sm:$0xf] }
 0x5da   :  { %1049 = vmatpush.bf16.msra.mxu1 %v2300_v59 }
 0x659   :  { %v869_v25 = vpop.f32.mrf.mxu3 }
 0x65a   :  { %v874_v4 = vpack.c.bf16 %v869_v25, %v869_v25 }
 0x65c   :  { %v876_v27 = vunpack.c.l.bf16 %v874_v4 }
 0x65e   :  { %v2880_v31 = vadd.f32 %v876_v27, %v2630_v10  ;;  %v2299_v10 = vld [vmem:[%s3236_s6 + $0x8] sm:$0xff] }
 0x65f   :  { %943 = vmatpush.bf16.msrb.mxu0 %v2299_v10 }
 0x660   :  { %v880_v3 = vmul.f32 %v2880_v31, %v2880_v31 }
 0x661   :  { %v871_v32 = vpop.f32.mrf.mxu3 }
 0x662   :  { %v875_v23 = vpack.c.bf16 %v871_v32, %v871_v32  ;;  %v882_v26 = vsel %vm50_vm0, %v880_v3, 0.0 }
 0x663   :  { %883 = vadd.xlane.f32.xlu1 %v882_v26  ;;  %944 = vmatpush.bf16.msrb.mxu0 %v2298_v37 }
 0x664   :  { %v877_v15 = vunpack.c.l.bf16 %v875_v23 }
 0x666   :  { %v2886_v11 = vadd.f32 %v877_v15, %v2634_v12 }
 0x668   :  { %v881_v16 = vmul.f32 %v2886_v11, %v2886_v11 }
 0x66a   :  { %v885_v34 = vsel %vm50_vm0, %v881_v16, 0.0 }
 0x66b   :  { %886 = vadd.xlane.f32.xlu2 %v885_v34 }
 0x6d6   :  { %v884_v35 = vpop.xlane.xlu1 %883 }
 0x6d7   :  { %v888_v36 = vmul.f32 %v884_v35, %v2652_v28 }
 0x6d9   :  { %v890_v12 = vadd.f32 1e-05, %v888_v36 }
 0x6db   :  { %2468 = vrsqrt.f32 %v890_v12  ;;  %vm898_vm13 = vweird.f32 %v890_v12 }
 0x6de   :  { %v887_v38 = vpop.xlane.xlu2 %886 }
 0x6df   :  { %v889_v40 = vmul.f32 %v887_v38, %v2652_v28 }
 0x6e1   :  { %v2469_v33 = vpop.eup %2468  ;;  %v891_v41 = vadd.f32 1e-05, %v889_v40 }
 0x6e2   :  { %v893_v42 = vmul.f32 %v2469_v33, %v890_v12  ;;  %vm899_vm12 = vweird.f32 %v2469_v33 }
 0x6e3   :  { %2470 = vrsqrt.f32 %v891_v41  ;;  %vm900_vm14 = vmor %vm898_vm13, %vm899_vm12  ;;  %vm908_vm1 = vweird.f32 %v891_v41 }
 0x6e4   :  { %v894_v43 = vmul.f32 %v2469_v33, %v893_v42 }
 0x6e6   :  { %v895_v44 = vmul.f32 0.5, %v894_v43 }
 0x6e8   :  { %v896_v45 = vsub.f32 1.5, %v895_v44 }
 0x6e9   :  { %v2471_v46 = vpop.eup %2470 }
 0x6ea   :  { %v903_v29 = vmul.f32 %v2471_v46, %v891_v41  ;;  %v897_v48 = vmul.f32 %v2469_v33, %v896_v45  ;;  %vm909_vm15 = vweird.f32 %v2471_v46 }
 0x6eb   :  { %vm910_vm2 = vmor %vm908_vm1, %vm909_vm15  ;;  %vm1038_vm15 = vcmask 523264  }
 0x6ec   :  { %v904_v50 = vmul.f32 %v2471_v46, %v903_v29  ;;  %v901_v51 = vsel %vm900_vm14, %v2469_v33, %v897_v48 }
 0x6ed   :  { %v912_v56 = vmul.f32 %v901_v51, %v2880_v31 }
 0x6ee   :  { %v905_v52 = vmul.f32 0.5, %v904_v50 }
 0x6ef   :  { %v915_v60 = vmul.f32 %v914_v54, %v912_v56 }
 0x6f0   :  { %v906_v53 = vsub.f32 1.5, %v905_v52 }
 0x6f2   :  { %v907_v17 = vmul.f32 %v2471_v46, %v906_v53 }
 0x6f4   :  { %v911_v57 = vsel %vm910_vm2, %v2471_v46, %v907_v17 }
 0x6f5   :  { %v913_v58 = vmul.f32 %v911_v57, %v2886_v11 }
 0x6f7   :  { %v916_v61 = vmul.f32 %v914_v54, %v913_v58 }
 0x6f9   :  { %v917_v49 = vpack.c.bf16 %v916_v61, %v915_v60 }
 0x6fb   :  { %2177 = vmatmul.msk.bf16.vlgmr.msrb.gmra.mxu0 %vm50_vm0, %v917_v49 }
 0x778   :  { %v946_v62 = vpop.f32.mrf.mxu0 }
 0x779   :  { %v951_v39 = vpack.c.bf16 %v946_v62, %v946_v62 }
 0x77b   :  { %v953_v55 = vunpack.c.l.bf16 %v951_v39 }
 0x77d   :  { %v2178_v5 = vmul.f32 -1.442695, %v953_v55 }
 0x77f   :  { %2472 = vpow2.f32 %v2178_v5 }
 0x780   :  { %v948_v47 = vpop.f32.mrf.mxu0 }
 0x781   :  { %v952_v63 = vpack.c.bf16 %v948_v47, %v948_v47  ;;  %v2307_v47 = vld [vmem:[%s3232_s4 + $0x34] sm:$0xf0] }
 0x783   :  { %v954_v0 = vunpack.c.l.bf16 %v952_v63  ;;  %v2306_v63 = vld [vmem:[%s3232_s4 + $0x34] sm:$0xf] }
 0x785   :  { %v2360_v2 = vpack.i.bf16 %v954_v0, %v953_v55  ;;  %v2179_v9 = vmul.f32 -1.442695, %v954_v0  ;;  %v2473_v13 = vpop.eup %2472 }
 0x786   :  { %v961_v19 = vadd.f32 1.0, %v2473_v13  ;;  %v2205_v13 = vld [vmem:[%s3232_s4 + $0x28] sm:$0xf0] }
 0x787   :  { %2361 = vrot.lane.b32.xlu0 %v2360_v2, %s2539_s29  ;;  %2474 = vpow2.f32 %v2179_v9  ;;  %v2305_v2 = vld [vmem:[%s3232_s4 + $0x24] sm:$0xf0] }
 0x788   :  { %2476 = vrcp.f32 %v961_v19  ;;  %vm968_vm5 = vweird.f32 %v961_v19  ;;  %v974_v10 = vand.u32 2147483648, %v961_v19  ;;  %v972_v36 = vand.u32 2147483647, %v961_v19 }
 0x789   :  { %v2204_v9 = vor.u32 %v2305_v2, %v2203_v1 }
 0x78a   :  { %v975_v40 = vor.u32 1.1754944e-38, %v974_v10  ;;  %vm973_vm13 = vcmp.eq.f32.partialorder %v972_v36, 8.507059e+37 }
 0x78d   :  { %v2475_v14 = vpop.eup %2474 }
 0x78e   :  { %v962_v21 = vadd.f32 1.0, %v2475_v14  ;;  %v2477_v25 = vpop.eup %2476  ;;  %v2208_v14 = vor.u32 %v2304_v22, %v2205_v13 }
 0x78f   :  { %v964_v27 = vmul.f32 %v2477_v25, %v961_v19  ;;  %vm969_vm3 = vweird.f32 %v2477_v25 }
 0x790   :  { %2478 = vrcp.f32 %v962_v21  ;;  %v989_v35 = vand.u32 2147483648, %v962_v21  ;;  %vm970_vm6 = vmor %vm968_vm5, %vm969_vm3  ;;  %vm983_vm7 = vweird.f32 %v962_v21  ;;  %v987_v37 = vand.u32 2147483647, %v962_v21 }
 0x791   :  { %v965_v32 = vsub.f32 1.0, %v964_v27 }
 0x792   :  { %v990_v33 = vor.u32 1.1754944e-38, %v989_v35  ;;  %vm988_vm14 = vcmp.eq.f32.partialorder %v987_v37, 8.507059e+37 }
 0x793   :  { %v966_v26 = vmul.f32 %v2477_v25, %v965_v32 }
 0x795   :  { %v967_v16 = vadd.f32 %v2477_v25, %v966_v26 }
 0x796   :  { %v2479_v4 = vpop.eup %2478 }
 0x797   :  { %v979_v3 = vmul.f32 %v2479_v4, %v962_v21  ;;  %vm984_vm4 = vweird.f32 %v2479_v4  ;;  %v971_v12 = vsel %vm970_vm6, %v2477_v25, %v967_v16 }
 0x798   :  { %vm985_vm12 = vmor %vm983_vm7, %vm984_vm4  ;;  %v976_v41 = vsel %vm973_vm13, %v975_v40, %v971_v12  ;;  %v2958_v12 = vld [vmem:[%s3234_s3] sm:$0x1f] }
 0x799   :  { %v980_v23 = vsub.f32 1.0, %v979_v3  ;;  %v993_v44 = vmul.f32 %v976_v41, %v953_v55  ;;  %v2216_v55 = vor.u32 %v2306_v63, %v2213_v8 }
 0x79b   :  { %v981_v15 = vmul.f32 %v2479_v4, %v980_v23  ;;  %1148 = vmatpush.bf16.msrb.mxu3 %v2216_v55 }
 0x79d   :  { %v982_v34 = vadd.f32 %v2479_v4, %v981_v15 }
 0x79f   :  { %v986_v38 = vsel %vm985_vm12, %v2479_v4, %v982_v34  ;;  %1149 = vmatpush.bf16.msrb.mxu3 %v2208_v14 }
 0x7a0   :  { %v991_v42 = vsel %vm988_vm14, %v990_v33, %v986_v38  ;;  %v1096_v38 = vperm.slane %v2958_v12, 1 }
 0x7a1   :  { %v994_v45 = vmul.f32 %v991_v42, %v954_v0 }
 0x7f9   :  { %v2362_v43 = vpop.permute.xlu0 %2361 }
 0x7fa   :  { %v2364_v46 = vunpack.i.h.bf16 %v2362_v43  ;;  %v2363_v29 = vunpack.i.l.bf16 %v2362_v43 }
 0x7fc   :  { %v1003_v48 = vmul.f32 %v2363_v29, %v993_v44  ;;  %v1004_v50 = vmul.f32 %v2364_v46, %v994_v45 }
 0x7fe   :  { %v1005_v52 = vpack.c.bf16 %v1004_v50, %v1003_v48 }
 0x800   :  { %2196 = vmatmul.msk.bf16.vlgmr.msra.gmra.mxu1 %vm1038_vm15, %v1005_v52 }
 0x87d   :  { %v1051_v51 = vpop.f32.mrf.mxu1 }
 0x87e   :  { %v1056_v53 = vpack.c.bf16 %v1051_v51, %v1051_v51 }
 0x880   :  { %v1058_v17 = vunpack.c.l.bf16 %v1056_v53 }
 0x882   :  { %v2918_v54 = vadd.f32 %v1058_v17, %v2880_v31  ;;  %v2211_v31 = vld [vmem:[%s3232_s4 + $0x30] sm:$0xf] }
 0x884   :  { %v1062_v56 = vmul.f32 %v2918_v54, %v2918_v54 }
 0x885   :  { %v1053_v57 = vpop.f32.mrf.mxu1 }
 0x886   :  { %v1057_v58 = vpack.c.bf16 %v1053_v57, %v1053_v57  ;;  %v1064_v60 = vsel %vm50_vm0, %v1062_v56, 0.0 }
 0x887   :  { %1065 = vadd.xlane.f32.xlu0 %v1064_v60 }
 0x888   :  { %v1059_v61 = vunpack.c.l.bf16 %v1057_v58 }
 0x88a   :  { %v2924_v49 = vadd.f32 %v1059_v61, %v2886_v11  ;;  %v2212_v11 = vor.u32 %v2307_v47, %v2211_v31 }
 0x88c   :  { %v1063_v62 = vmul.f32 %v2924_v49, %v2924_v49  ;;  %1134 = vmatpush.bf16.msrb.mxu2 %v2212_v11 }
 0x88e   :  { %v1067_v39 = vsel %vm50_vm0, %v1063_v62, 0.0 }
 0x88f   :  { %1068 = vadd.xlane.f32.xlu1 %v1067_v39 }
 0x890   :  { %1135 = vmatpush.bf16.msrb.mxu2 %v2204_v9 }
 0x8fa   :  { %v1066_v0 = vpop.xlane.xlu0 %1065 }
 0x8fb   :  { %v1070_v5 = vmul.f32 %v1066_v0, %v2652_v28 }
 0x8fd   :  { %v1072_v19 = vadd.f32 1e-05, %v1070_v5  ;;  %v2533_v5 = vld [vmem:[%s3233_s10] sm:$0xff] }
 0x8ff   :  { %2480 = vrsqrt.f32 %v1072_v19  ;;  %vm1080_vm2 = vweird.f32 %v1072_v19 }
 0x902   :  { %v1069_v21 = vpop.xlane.xlu1 %1068 }
 0x903   :  { %v1071_v59 = vmul.f32 %v1069_v21, %v2652_v28 }
 0x905   :  { %v2481_v25 = vpop.eup %2480  ;;  %v1073_v4 = vadd.f32 1e-05, %v1071_v59 }
 0x906   :  { %v1075_v27 = vmul.f32 %v2481_v25, %v1072_v19  ;;  %vm1081_vm1 = vweird.f32 %v2481_v25 }
 0x907   :  { %2482 = vrsqrt.f32 %v1073_v4  ;;  %vm1082_vm3 = vmor %vm1080_vm2, %vm1081_vm1  ;;  %vm1090_vm5 = vweird.f32 %v1073_v4 }
 0x908   :  { %v1076_v3 = vmul.f32 %v2481_v25, %v1075_v27 }
 0x90a   :  { %v1077_v32 = vmul.f32 0.5, %v1076_v3 }
 0x90c   :  { %v1078_v23 = vsub.f32 1.5, %v1077_v32 }
 0x90d   :  { %v2483_v26 = vpop.eup %2482 }
 0x90e   :  { %v1085_v15 = vmul.f32 %v2483_v26, %v1073_v4  ;;  %v1079_v16 = vmul.f32 %v2481_v25, %v1078_v23  ;;  %vm1091_vm4 = vweird.f32 %v2483_v26 }
 0x90f   :  { %vm1092_vm6 = vmor %vm1090_vm5, %vm1091_vm4 }
 0x910   :  { %v1086_v34 = vmul.f32 %v2483_v26, %v1085_v15  ;;  %v1083_v35 = vsel %vm1082_vm3, %v2481_v25, %v1079_v16 }
 0x911   :  { %v1094_v40 = vmul.f32 %v1083_v35, %v2918_v54 }
 0x912   :  { %v1087_v10 = vmul.f32 0.5, %v1086_v34 }
 0x913   :  { %v1097_v42 = vmul.f32 %v1096_v38, %v1094_v40 }
 0x914   :  { %v1088_v36 = vsub.f32 1.5, %v1087_v10 }
 0x916   :  { %v1089_v37 = vmul.f32 %v2483_v26, %v1088_v36 }
 0x918   :  { %v1093_v33 = vsel %vm1092_vm6, %v2483_v26, %v1089_v37 }
 0x919   :  { %v1095_v41 = vmul.f32 %v1093_v33, %v2924_v49 }
 0x91b   :  { %v1098_v43 = vmul.f32 %v1096_v38, %v1095_v41 }
 0x91d   :  { %v1099_v44 = vpack.c.bf16 %v1098_v43, %v1097_v42 }
 0x91f   :  { %2217 = vmatmul.msk.bf16.vlgmr.msrb.gmra.mxu2 %vm50_vm0, %v1099_v44  ;;  %2218 = vmatmul.msk.bf16.vlgmr.msrb.gmra.mxu3 %vm50_vm0, %v1099_v44 }
 0x9a2   :  { %v1137_v45 = vpop.f32.mrf.mxu2  ;;  %v1151_v46 = vpop.f32.mrf.mxu3 }
 0x9a3   :  { %v1156_v29 = vpack.c.bf16 %v1151_v46, %v1137_v45 }
 0x9a5   :  { %v1159_v48 = vunpack.c.h.bf16 %v1156_v29  ;;  %v2967_v53 = vunpack.c.l.bf16 %v1156_v29 }
 0x9a7   :  { %v1178_v50 = vmul.f32 %v1159_v48, %v2719_v18  ;;  %v1164_v58 = vmul.f32 %v2967_v53, %v2736_v30  ;;  %v1176_v62 = vmul.f32 %v2967_v53, %v2729_v24  ;;  %v1162_v9 = vmul.f32 %v2533_v5, %v2967_v53 }
 0x9a9   :  { %1182 = vrot.lane.b32.xlu2 %v1178_v50, %s2540_s30 }
 0x9aa   :  { %v1139_v52 = vpop.f32.mrf.mxu2  ;;  %v1153_v51 = vpop.f32.mrf.mxu3 }
 0x9ab   :  { %v1157_v17 = vpack.c.bf16 %v1153_v51, %v1139_v52 }
 0x9ad   :  { %v2969_v56 = vunpack.c.l.bf16 %v1157_v17  ;;  %v1161_v57 = vunpack.c.h.bf16 %v1157_v17 }
 0x9af   :  { %v1179_v60 = vmul.f32 %v1161_v57, %v2700_v6  ;;  %v2976_v61 = vpack.i.bf16 %v2969_v56, %v2967_v53  ;;  %v1177_v39 = vmul.f32 %v2969_v56, %v2723_v20  ;;  %v1165_v6 = vmul.f32 %v2969_v56, %v2702_v7  ;;  %v2534_v7 = vld [vmem:[%s3233_s10 + $0x8] sm:$0xff] }
 0x9b0   :  { %v1163_v13 = vmul.f32 %v2534_v7, %v2969_v56 }
 0x9b1   :  { %1168 = vrot.lane.b32.xlu2 %v1164_v58, %s2540_s30  ;;  %1184 = vrot.lane.b32.xlu1 %v1179_v60, %s2540_s30 }
 0xa03   :  { %v1183_v18 = vpop.permute.xlu2 %1182 }
 0xa04   :  { %v1188_v47 = vadd.f32 %v1183_v18, %v1176_v62 }
 0xa06   :  { %v1238_v14 = vpack.c.bf16 %v1188_v47, %v1188_v47 }
 0xa08   :  { %v1275_v32 = vunpack.c.l.b16 %v1238_v14 }
 0xa0a   :  { %v1276_v10 = vpack.c.b16 %v1275_v32, %v1275_v32 }
 0xa0b   :  { %v1169_v0 = vpop.permute.xlu2 %1168 }
 0xa0c   :  { %v2998_v27 = vadd.f32 %v1169_v0, %v1162_v9 }
 0xa0e   :  { %v1210_v9 = vpack.c.bf16 %v2998_v27, %v2998_v27 }
 0xa23   :  { %v1185_v31 = vpop.permute.xlu1 %1184 }
 0xa24   :  { %v1189_v30 = vadd.f32 %v1185_v31, %v1177_v39 }
 0xa26   :  { %v2375_v63 = vpack.i.bf16 %v1189_v30, %v1188_v47  ;;  %v1239_v25 = vpack.c.bf16 %v1189_v30, %v1189_v30 }
 0xa28   :  { %2376 = vrot.lane.b32.xlu2 %v2375_v63, %s2543_s16  ;;  %2371 = vrot.lane.b32.xlu1 %v2375_v63, %s2542_s15  ;;  %v1299_v16 = vunpack.c.l.b16 %v1239_v25 }
 0xa29   :  { %2366 = vrot.lane.b32.xlu0 %v2375_v63, %s2541_s14 }
 0xa2a   :  { %v1300_v38 = vpack.c.b16 %v1299_v16, %v1299_v16 }
 0xa31   :  { %1170 = vrot.lane.b32.xlu0 %v1165_v6, %s2540_s30 }
 0xa82   :  { %v2377_v34 = vpop.permute.xlu2 %2376 }
 0xa83   :  { %v2378_v35 = vunpack.i.l.bf16 %v2377_v34  ;;  %v2379_v40 = vunpack.i.h.bf16 %v2377_v34 }
 0xa85   :  { %v1242_v33 = vpack.c.bf16 %v2378_v35, %v2378_v35  ;;  %v1243_v43 = vpack.c.bf16 %v2379_v40, %v2379_v40 }
 0xa87   :  { %v1371_v44 = vunpack.c.l.b16 %v1242_v33  ;;  %v1395_v46 = vunpack.c.l.b16 %v1243_v43 }
 0xa89   :  { %v1372_v29 = vpack.c.b16 %v1371_v44, %v1371_v44  ;;  %v1396_v48 = vpack.c.b16 %v1395_v46, %v1395_v46 }
 0xa9a   :  { %v2372_v1 = vpop.permute.xlu1 %2371 }
 0xa9b   :  { %v2367_v11 = vpop.permute.xlu0 %2366  ;;  %v2373_v19 = vunpack.i.l.bf16 %v2372_v1  ;;  %v2374_v23 = vunpack.i.h.bf16 %v2372_v1 }
 0xa9c   :  { %v2369_v24 = vunpack.i.h.bf16 %v2367_v11  ;;  %v2368_v8 = vunpack.i.l.bf16 %v2367_v11 }
 0xa9d   :  { %v1244_v26 = vpack.c.bf16 %v2373_v19, %v2373_v19  ;;  %v1245_v36 = vpack.c.bf16 %v2374_v23, %v2374_v23 }
 0xa9e   :  { %v1241_v55 = vpack.c.bf16 %v2369_v24, %v2369_v24  ;;  %v1240_v20 = vpack.c.bf16 %v2368_v8, %v2368_v8 }
 0xa9f   :  { %v1419_v37 = vunpack.c.l.b16 %v1244_v26  ;;  %v1443_v41 = vunpack.c.l.b16 %v1245_v36 }
 0xaa0   :  { %v1347_v2 = vunpack.c.l.b16 %v1241_v55  ;;  %v1323_v22 = vunpack.c.l.b16 %v1240_v20 }
 0xaa1   :  { %v1420_v42 = vpack.c.b16 %v1419_v37, %v1419_v37  ;;  %v1444_v45 = vpack.c.b16 %v1443_v41, %v1443_v41 }
 0xaa2   :  { %v1348_v21 = vpack.c.b16 %v1347_v2, %v1347_v2  ;;  %v1324_v59 = vpack.c.b16 %v1323_v22, %v1323_v22 }
 0xaa3   :  { %v1171_v4 = vpop.permute.xlu0 %1170 }
 0xaa4   :  { %v3000_v3 = vadd.f32 %v1171_v4, %v1163_v13  ;;  %1349 = vrot.lane.b32.xlu1 %v1348_v21, %s2538_s24  ;;  %1325 = vrot.lane.b32.xlu0 %v1324_v59, %s2538_s24 }
 0xaa6   :  { %v2380_v15 = vpack.i.bf16 %v3000_v3, %v2998_v27  ;;  %v1211_v7 = vpack.c.bf16 %v3000_v3, %v3000_v3 }
 0xaa8   :  { %2381 = vrot.lane.b32.xlu2 %v2380_v15, %s2541_s14 }
 0xaac   :  { %1301 = vrot.lane.b32.xlu1 %v1300_v38, %s2538_s24  ;;  %1277 = vrot.lane.b32.xlu0 %v1276_v10, %s2538_s24 }
 0xab0   :  { %1421 = vrot.lane.b32.xlu2 %v1420_v42, %s2538_s24 }
 0xab4   :  { %1445 = vrot.lane.b32.xlu0 %v1444_v45, %s2538_s24  ;;  %2386 = vrot.lane.b32.xlu1 %v2380_v15, %s2542_s15 }
 0xab8   :  { %1373 = vrot.lane.b32.xlu2 %v1372_v29, %s2538_s24 }
 0xabc   :  { %1397 = vrot.lane.b32.xlu0 %v1396_v48, %s2538_s24  ;;  %2391 = vrot.lane.b32.xlu1 %v2380_v15, %s2543_s16 }
 0xac0   :  { %2396 = vrot.lane.b32.xlu2 %v2976_v61, %s2541_s14 }
 0xac4   :  { %2401 = vrot.lane.b32.xlu0 %v2976_v61, %s2542_s15  ;;  %2406 = vrot.lane.b32.xlu1 %v2976_v61, %s2543_s16 }
 0xb02   :  { %v2382_v50 = vpop.permute.xlu2 %2381 }
 0xb03   :  { %v2384_v62 = vunpack.i.h.bf16 %v2382_v50  ;;  %v2383_v39 = vunpack.i.l.bf16 %v2382_v50 }
 0xb05   :  { %v1213_v61 = vpack.c.bf16 %v2384_v62, %v2384_v62  ;;  %v1212_v63 = vpack.c.bf16 %v2383_v39, %v2383_v39 }
 0xb0a   :  { %v1422_v52 = vpop.permute.xlu2 %1421 }
 0xb0b   :  { %v1427_v18 = vsel %vm323_vm8, %v1422_v52, 0 }
 0xb12   :  { %v1374_v51 = vpop.permute.xlu2 %1373 }
 0xb13   :  { %v1379_v2 = vsel %vm323_vm8, %v1374_v51, 0 }
 0xb16   :  { %v1350_v17 = vpop.permute.xlu1 %1349  ;;  %v1326_v57 = vpop.permute.xlu0 %1325 }
 0xb17   :  { %v1355_v58 = vsel %vm323_vm8, %v1350_v17, 0  ;;  %v1331_v60 = vsel %vm323_vm8, %v1326_v57, 0 }
 0xb18   :  { %1340 = vmatpush.bf16.xpose.msra.mxu2 %v1331_v60  ;;  %1364 = vmatpush.bf16.xpose.msra.mxu3 %v1355_v58 }
 0xb1a   :  { %v2397_v31 = vpop.permute.xlu2 %2396 }
 0xb1b   :  { %v2399_v47 = vunpack.i.h.bf16 %v2397_v31  ;;  %v2398_v30 = vunpack.i.l.bf16 %v2397_v31 }
 0xb1d   :  { %v1269_v6 = vpack.c.bf16 %v2399_v47, %v2399_v47  ;;  %v1268_v11 = vpack.c.bf16 %v2398_v30, %v2398_v30 }
 0xb1e   :  { %v1302_v24 = vpop.permute.xlu1 %1301  ;;  %v1278_v8 = vpop.permute.xlu0 %1277 }
 0xb1f   :  { %v1643_v55 = vunpack.c.l.b16 %v1269_v6  ;;  %v1619_v20 = vunpack.c.l.b16 %v1268_v11  ;;  %v1307_v0 = vsel %vm323_vm8, %v1302_v24, 0  ;;  %v1283_v1 = vsel %vm323_vm8, %v1278_v8, 0  ;;  %2221 = vmatmul.msk.bf16.vlgmr.msra.gmra.mxu2 %vm323_vm8, %v1212_v63  ;;  %2222 = vmatmul.msk.bf16.vlgmr.msra.gmra.mxu3 %vm323_vm8, %v1213_v61 }
 0xb20   :  { %1436 = vmatpush.bf16.xpose.msrb.mxu2 %v1427_v18  ;;  %1292 = vmatpush.bf16.xpose.msra.mxu0 %v1283_v1 }
 0xb21   :  { %1316 = vmatpush.bf16.xpose.msrb.mxu1 %v1307_v0  ;;  %v1644_v22 = vpack.c.b16 %v1643_v55, %v1643_v55  ;;  %v1620_v5 = vpack.c.b16 %v1619_v20, %v1619_v20 }
 0xb23   :  { %1645 = vrot.lane.b32.xlu0 %v1644_v22, %s2539_s29  ;;  %1621 = vrot.lane.b32.xlu2 %v1620_v5, %s2539_s29 }
 0xb26   :  { %v1446_v13 = vpop.permute.xlu0 %1445  ;;  %v2387_v14 = vpop.permute.xlu1 %2386 }
 0xb27   :  { %v1451_v19 = vsel %vm323_vm8, %v1446_v13, 0  ;;  %2219 = vmatmul.msk.bf16.vlgmr.msra.gmra.mxu0 %vm323_vm8, %v1210_v9  ;;  %v2389_v21 = vunpack.i.h.bf16 %v2387_v14  ;;  %v2388_v59 = vunpack.i.l.bf16 %v2387_v14 }
 0xb28   :  { %1388 = vmatpush.bf16.xpose.msrb.mxu0 %v1379_v2  ;;  %2220 = vmatmul.msk.bf16.vlgmr.msrb.gmra.mxu1 %vm323_vm8, %v1211_v7 }
 0xb29   :  { %1460 = vmatpush.bf16.xpose.msrb.mxu3 %v1451_v19  ;;  %v1217_v25 = vpack.c.bf16 %v2389_v21, %v2389_v21  ;;  %v1216_v4 = vpack.c.bf16 %v2388_v59, %v2388_v59 }
 0xb2e   :  { %v1398_v32 = vpop.permute.xlu0 %1397  ;;  %v2392_v23 = vpop.permute.xlu1 %2391 }
 0xb2f   :  { %v1403_v27 = vsel %vm323_vm8, %v1398_v32, 0  ;;  %2225 = vmatmul.msk.bf16.vlgmr.msrb.gmra.mxu2 %vm323_vm8, %v1216_v4  ;;  %v2394_v3 = vunpack.i.h.bf16 %v2392_v23  ;;  %v2393_v26 = vunpack.i.l.bf16 %v2392_v23 }
 0xb30   :  { %2226 = vmatmul.msk.bf16.vlgmr.msrb.gmra.mxu3 %vm323_vm8, %v1217_v25  ;;  %1412 = vmatpush.bf16.xpose.msra.mxu1 %v1403_v27 }
 0xb31   :  { %v1215_v15 = vpack.c.bf16 %v2394_v3, %v2394_v3  ;;  %v1214_v16 = vpack.c.bf16 %v2393_v26, %v2393_v26 }
 0xb36   :  { %v3044_v35 = vpop.permute.xlu0 %2401  ;;  %v3060_v55 = vpop.permute.xlu1 %2406 }
 0xb37   :  { %2223 = vmatmul.msk.bf16.vlgmr.msrb.gmra.mxu0 %vm323_vm8, %v1214_v16 }
 0xb38   :  { %2224 = vmatmul.msk.bf16.vlgmr.msra.gmra.mxu1 %vm323_vm8, %v1215_v15  ;;  %v1267_v15 = vpack.c.bf16 %v2969_v56, %v2969_v56 }
 0xb7d   :  { %v1622_v34 = vpop.permute.xlu2 %1621 }
 0xb7e   :  { %v1627_v10 = vsel %vm623_vm9, %v1622_v34, 0 }
 0xb7f   :  { %1636 = vmatpush.bf16.msra.mxu2 %v1627_v10  ;;  %v1595_v10 = vunpack.c.l.b16 %v1267_v15 }
 0xb95   :  { %v1646_v36 = vpop.permute.xlu0 %1645 }
 0xb96   :  { %v1651_v37 = vsel %vm623_vm9, %v1646_v36, 0 }
 0xb97   :  { %1660 = vmatpush.bf16.msra.mxu3 %v1651_v37 }
 0xba2   :  { %v1342_v38 = vpop.f32.mrf.mxu2  ;;  %v1366_v40 = vpop.f32.mrf.mxu3 }
 0xba3   :  { %v3049_v48 = vmul.f32 0.35355338, %v1342_v38  ;;  %v1469_v61 = vmul.f32 0.35355338, %v1366_v40  ;;  %v1596_v40 = vpack.c.b16 %v1595_v10, %v1595_v10 }
 0xba4   :  { %v1294_v33 = vpop.f32.mrf.mxu0 }
 0xba5   :  { %v1318_v41 = vpop.f32.mrf.mxu1  ;;  %v1466_v42 = vmul.f32 0.35355338, %v1294_v33  ;;  %v1480_v51 = vsel %vm323_vm8, %v3049_v48, -inf  ;;  %v1483_v11 = vsel %vm323_vm8, %v1469_v61, -inf }
 0xba6   :  { %v1467_v43 = vmul.f32 0.35355338, %v1318_v41  ;;  %v1266_v41 = vpack.c.bf16 %v2967_v53, %v2967_v53  ;;  %v2409_v53 = vunpack.i.h.bf16 %v3060_v55 }
 0xba7   :  { %v1474_v44 = vsel %vm323_vm8, %v1466_v42, -inf }
 0xba8   :  { %v1477_v45 = vsel %vm323_vm8, %v1467_v43, -inf  ;;  %1475 = vmax.xlane.f32.xlu1 %v1474_v44  ;;  %v1571_v56 = vunpack.c.l.b16 %v1266_v41 }
 0xba9   :  { %1478 = vmax.xlane.f32.xlu2 %v1477_v45  ;;  %v2404_v45 = vunpack.i.h.bf16 %v3044_v35 }
 0xbaa   :  { %v1344_v46 = vpop.f32.mrf.mxu2  ;;  %v1368_v29 = vpop.f32.mrf.mxu3  ;;  %v1572_v44 = vpack.c.b16 %v1571_v56, %v1571_v56 }
 0xbab   :  { %v1273_v46 = vpack.c.bf16 %v2404_v45, %v2404_v45 }
 0xbac   :  { %v1296_v50 = vpop.f32.mrf.mxu0 }
 0xbad   :  { %v1320_v52 = vpop.f32.mrf.mxu1  ;;  %v1739_v50 = vunpack.c.l.b16 %v1273_v46 }
 0xbb1   :  { %1481 = vmax.xlane.f32.xlu2 %v1480_v51  ;;  %v1740_v51 = vpack.c.b16 %v1739_v50, %v1739_v50 }
 0xbb2   :  { %v1438_v17 = vpop.f32.mrf.mxu2 }
 0xbb3   :  { %v1462_v57 = vpop.f32.mrf.mxu3  ;;  %v1472_v24 = vmul.f32 0.35355338, %v1438_v17  ;;  %v1271_v17 = vpack.c.bf16 %v2409_v53, %v2409_v53 }
 0xbb4   :  { %v1390_v58 = vpop.f32.mrf.mxu0  ;;  %v3070_v19 = vmul.f32 0.35355338, %v1462_v57 }
 0xbb5   :  { %v1414_v60 = vpop.f32.mrf.mxu1  ;;  %v3053_v18 = vmul.f32 0.35355338, %v1390_v58  ;;  %v1492_v8 = vsel %vm323_vm8, %v1472_v24, -inf  ;;  %v1691_v58 = vunpack.c.l.b16 %v1271_v17 }
 0xbb6   :  { %v1471_v62 = vmul.f32 0.35355338, %v1414_v60  ;;  %v1495_v32 = vsel %vm323_vm8, %v3070_v19, -inf }
 0xbb7   :  { %v1486_v39 = vsel %vm323_vm8, %v3053_v18, -inf }
 0xbb8   :  { %v1489_v31 = vsel %vm323_vm8, %v1471_v62, -inf  ;;  %1487 = vmax.xlane.f32.xlu0 %v1486_v39 }
 0xbb9   :  { %1490 = vmax.xlane.f32.xlu1 %v1489_v31 }
 0xbba   :  { %v1440_v47 = vpop.f32.mrf.mxu2 }
 0xbbb   :  { %v1464_v30 = vpop.f32.mrf.mxu3 }
 0xbbc   :  { %v1392_v63 = vpop.f32.mrf.mxu0 }
 0xbbd   :  { %v1416_v6 = vpop.f32.mrf.mxu1 }
 0xbc0   :  { %1484 = vmax.xlane.f32.xlu0 %v1483_v11 }
 0xbc8   :  { %1493 = vmax.xlane.f32.xlu0 %v1492_v8 }
 0xc1b   :  { %v1476_v20 = vpop.xlane.xlu1 %1475 }
 0xc1c   :  { %v1479_v0 = vpop.xlane.xlu2 %1478  ;;  %v1498_v1 = vsub.f32 %v1466_v42, %v1476_v20 }
 0xc1d   :  { %v1499_v2 = vsub.f32 %v1467_v43, %v1479_v0 }
 0xc1e   :  { %v1506_v22 = vmul.f32 1.442695, %v1498_v1 }
 0xc1f   :  { %v1508_v5 = vmul.f32 1.442695, %v1499_v2 }
 0xc20   :  { %2484 = vpow2.f32 %v1506_v22 }
 0xc21   :  { %2486 = vpow2.f32 %v1508_v5 }
 0xc24   :  { %v1482_v29 = vpop.xlane.xlu2 %1481 }
 0xc25   :  { %v1500_v52 = vsub.f32 %v3049_v48, %v1482_v29 }
 0xc26   :  { %v3062_v9 = vpop.eup %2484 }
 0xc27   :  { %v3064_v7 = vpop.eup %2486  ;;  %v1522_v13 = vsel %vm323_vm8, %v3062_v9, 0.0  ;;  %v1510_v57 = vmul.f32 1.442695, %v1500_v52 }
 0xc28   :  { %v1525_v14 = vsel %vm323_vm8, %v3064_v7, 0.0  ;;  %1523 = vadd.xlane.f32.xlu1 %v1522_v13 }
 0xc29   :  { %1526 = vadd.xlane.f32.xlu2 %v1525_v14 }
 0xc2b   :  { %v1488_v21 = vpop.xlane.xlu0 %1487 }
 0xc2c   :  { %v1491_v59 = vpop.xlane.xlu1 %1490  ;;  %v1502_v60 = vsub.f32 %v3053_v18, %v1488_v21 }
 0xc2d   :  { %v1503_v25 = vsub.f32 %v1471_v62, %v1491_v59  ;;  %v1692_v62 = vpack.c.b16 %v1691_v58, %v1691_v58 }
 0xc2e   :  { %v1514_v39 = vmul.f32 1.442695, %v1502_v60 }
 0xc2f   :  { %v1516_v4 = vmul.f32 1.442695, %v1503_v25  ;;  %v2403_v25 = vunpack.i.l.bf16 %v3044_v35 }
 0xc30   :  { %1496 = vmax.xlane.f32.xlu1 %v1495_v32 }
 0xc31   :  { %2488 = vpow2.f32 %v1516_v4 }
 0xc33   :  { %v1485_v23 = vpop.xlane.xlu0 %1484 }
 0xc34   :  { %v1501_v27 = vsub.f32 %v1469_v61, %v1485_v23  ;;  %v2408_v61 = vunpack.i.l.bf16 %v3060_v55 }
 0xc36   :  { %v1512_v3 = vmul.f32 1.442695, %v1501_v27  ;;  %v1270_v18 = vpack.c.bf16 %v2408_v61, %v2408_v61 }
 0xc37   :  { %v3074_v26 = vpop.eup %2488 }
 0xc38   :  { %2490 = vpow2.f32 %v1512_v3  ;;  %v1537_v16 = vsel %vm323_vm8, %v3074_v26, 0.0  ;;  %v1667_v63 = vunpack.c.l.b16 %v1270_v18  ;;  %v1272_v3 = vpack.c.bf16 %v2403_v25, %v2403_v25 }
 0xc39   :  { %1538 = vadd.xlane.f32.xlu0 %v1537_v16 }
 0xc3a   :  { %v1668_v6 = vpack.c.b16 %v1667_v63, %v1667_v63 }
 0xc3b   :  { %v1494_v34 = vpop.xlane.xlu0 %1493 }
 0xc3c   :  { %v1504_v36 = vsub.f32 %v1472_v24, %v1494_v34  ;;  %v1715_v34 = vunpack.c.l.b16 %v1272_v3 }
 0xc3e   :  { %v3080_v37 = vpop.eup %2490  ;;  %v1518_v38 = vmul.f32 1.442695, %v1504_v36  ;;  %v1716_v10 = vpack.c.b16 %v1715_v34, %v1715_v34 }
 0xc3f   :  { %v1531_v33 = vsel %vm323_vm8, %v3080_v37, 0.0 }
 0xc40   :  { %2492 = vpow2.f32 %v1518_v38 }
 0xc41   :  { %1597 = vrot.lane.b32.xlu2 %v1596_v40, %s2539_s29  ;;  %1532 = vadd.xlane.f32.xlu0 %v1531_v33  ;;  %2494 = vpow2.f32 %v1510_v57 }
 0xc42   :  { %2496 = vpow2.f32 %v1514_v39 }
 0xc46   :  { %v3087_v42 = vpop.eup %2492 }
 0xc47   :  { %v1540_v43 = vsel %vm323_vm8, %v3087_v42, 0.0  ;;  %v3098_v31 = vpop.eup %2494 }
 0xc48   :  { %v1528_v47 = vsel %vm323_vm8, %v3098_v31, 0.0  ;;  %v3102_v48 = vpop.eup %2496 }
 0xc49   :  { %1541 = vadd.xlane.f32.xlu0 %v1540_v43  ;;  %1573 = vrot.lane.b32.xlu1 %v1572_v44, %s2539_s29  ;;  %v1534_v30 = vsel %vm323_vm8, %v3102_v48, 0.0 }
 0xc5d   :  { %1741 = vrot.lane.b32.xlu0 %v1740_v51, %s2539_s29 }
 0xc65   :  { %1693 = vrot.lane.b32.xlu0 %v1692_v62, %s2539_s29 }
 0xc6a   :  { %1529 = vadd.xlane.f32.xlu2 %v1528_v47 }
 0xc73   :  { %1535 = vadd.xlane.f32.xlu1 %v1534_v30 }
 0xc8c   :  { %1669 = vrot.lane.b32.xlu1 %v1668_v6, %s2539_s29 }
 0xc9b   :  { %v1524_v11 = vpop.xlane.xlu1 %1523 }
 0xc9c   :  { %v1527_v24 = vpop.xlane.xlu2 %1526 }
 0xc9d   :  { %2498 = vrcp.f32 %v1527_v24 }
 0xca3   :  { %v2499_v8 = vpop.eup %2498  ;;  %v1497_v20 = vpop.xlane.xlu1 %1496 }
 0xca4   :  { %v1555_v0 = vmul.f32 %v2499_v8, %v3064_v7  ;;  %v1598_v1 = vpop.permute.xlu2 %1597  ;;  %v1505_v2 = vsub.f32 %v3070_v19, %v1497_v20 }
 0xca5   :  { %v1603_v22 = vsel %vm623_vm9, %v1598_v1, 0 }
 0xca6   :  { %v1563_v5 = vpack.c.bf16 %v1555_v0, %v1555_v0  ;;  %v1520_v13 = vmul.f32 1.442695, %v1505_v2  ;;  %1612 = vmatpush.bf16.msrb.mxu1 %v1603_v22 }
 0xca8   :  { %2500 = vpow2.f32 %v1520_v13 }
 0xca9   :  { %2228 = vmatmul.msk.bf16.vlgmr.msrb.gmra.mxu1 %vm323_vm8, %v1563_v5  ;;  %2502 = vrcp.f32 %v1524_v11 }
 0xcac   :  { %v1539_v55 = vpop.xlane.xlu0 %1538 }
 0xcae   :  { %v2501_v14 = vpop.eup %2500 }
 0xcaf   :  { %v1543_v21 = vsel %vm323_vm8, %v2501_v14, 0.0  ;;  %v2503_v7 = vpop.eup %2502 }
 0xcb0   :  { %1544 = vadd.xlane.f32.xlu2 %v1543_v21  ;;  %v1554_v19 = vmul.f32 %v2503_v7, %v3062_v9  ;;  %v2309_v21 = vld [vmem:[%s3235_s5 + $0x18] sm:$0xff] }
 0xcb2   :  { %v1562_v15 = vpack.c.bf16 %v1554_v19, %v1554_v19 }
 0xcb4   :  { %v1533_v59 = vpop.xlane.xlu0 %1532 }
 0xcb5   :  { %2504 = vrcp.f32 %v1533_v59  ;;  %v2308_v59 = vld [vmem:[%s3235_s5 + $0x10] sm:$0xff] }
 0xcb6   :  { %2506 = vrcp.f32 %v1539_v55 }
 0xcbb   :  { %v2505_v4 = vpop.eup %2504  ;;  %v1574_v32 = vpop.permute.xlu1 %1573 }
 0xcbc   :  { %v1557_v23 = vmul.f32 %v2505_v4, %v3080_v37  ;;  %v1579_v27 = vsel %vm623_vm9, %v1574_v32, 0  ;;  %v1542_v36 = vpop.xlane.xlu0 %1541  ;;  %v2507_v37 = vpop.eup %2506 }
 0xcbd   :  { %1588 = vmatpush.bf16.msra.mxu0 %v1579_v27  ;;  %v1559_v38 = vmul.f32 %v2507_v37, %v3074_v26 }
 0xcbe   :  { %v1565_v16 = vpack.c.bf16 %v1557_v23, %v1557_v23 }
 0xcbf   :  { %v1567_v41 = vpack.c.bf16 %v1559_v38, %v1559_v38 }
 0xcc0   :  { %2230 = vmatmul.msk.bf16.vlgmr.msra.gmra.mxu3 %vm323_vm8, %v1565_v16  ;;  %2227 = vmatmul.msk.bf16.vlgmr.msra.gmra.mxu0 %vm323_vm8, %v1562_v15 }
 0xcc8   :  { %1717 = vrot.lane.b32.xlu2 %v1716_v10, %s2539_s29 }
 0xccf   :  { %v1742_v35 = vpop.permute.xlu0 %1741 }
 0xcd0   :  { %v1747_v9 = vsel %vm623_vm9, %v1742_v35, 0 }
 0xcd1   :  { %1756 = vmatpush.bf16.msrb.mxu3 %v1747_v9 }
 0xcd7   :  { %v1694_v40 = vpop.permute.xlu0 %1693 }
 0xcd8   :  { %v1699_v33 = vsel %vm623_vm9, %v1694_v40, 0 }
 0xcd9   :  { %1708 = vmatpush.bf16.msra.mxu1 %v1699_v33 }
 0xcdc   :  { %2232 = vmatmul.msk.bf16.vlgmr.msra.gmra.mxu1 %vm323_vm8, %v1567_v41 }
 0xcdd   :  { %v1530_v56 = vpop.xlane.xlu2 %1529 }
 0xcde   :  { %2508 = vrcp.f32 %v1530_v56 }
 0xce4   :  { %v2509_v43 = vpop.eup %2508 }
 0xce5   :  { %v1556_v44 = vmul.f32 %v2509_v43, %v3098_v31 }
 0xce6   :  { %v1536_v46 = vpop.xlane.xlu1 %1535 }
 0xce7   :  { %v1564_v45 = vpack.c.bf16 %v1556_v44, %v1556_v44  ;;  %2510 = vrcp.f32 %v1536_v46 }
 0xce8   :  { %2512 = vrcp.f32 %v1542_v36 }
 0xce9   :  { %2229 = vmatmul.msk.bf16.vlgmr.msra.gmra.mxu2 %vm323_vm8, %v1564_v45 }
 0xced   :  { %v2511_v29 = vpop.eup %2510 }
 0xcee   :  { %v1558_v26 = vmul.f32 %v2511_v29, %v3102_v48  ;;  %v2513_v57 = vpop.eup %2512 }
 0xcef   :  { %v1560_v60 = vmul.f32 %v2513_v57, %v3087_v42 }
 0xcf0   :  { %v1566_v52 = vpack.c.bf16 %v1558_v26, %v1558_v26 }
 0xcf1   :  { %v1568_v48 = vpack.c.bf16 %v1560_v60, %v1560_v60 }
 0xcfe   :  { %v1670_v50 = vpop.permute.xlu1 %1669 }
 0xcff   :  { %v1675_v53 = vsel %vm623_vm9, %v1670_v50, 0 }
 0xd00   :  { %1684 = vmatpush.bf16.msrb.mxu0 %v1675_v53 }
 0xd03   :  { %2231 = vmatmul.msk.bf16.vlgmr.msrb.gmra.mxu0 %vm323_vm8, %v1566_v52 }
 0xd04   :  { %1819 = vmatpush.bf16.msra.mxu0 %v2309_v21  ;;  %v2315_v21 = vld [vmem:[%s3237_s7 + $0x38] sm:$0xff] }
 0xd08   :  { %1820 = vmatpush.bf16.msra.mxu0 %v2308_v59 }
 0xd23   :  { %v1545_v51 = vpop.xlane.xlu2 %1544 }
 0xd24   :  { %2514 = vrcp.f32 %v1545_v51  ;;  %v2310_v51 = vld [vmem:[%s3236_s6 + $0x10] sm:$0xff] }
 0xd26   :  { %v1614_v17 = vpop.f32.mrf.mxu1 }
 0xd2a   :  { %v2515_v58 = vpop.eup %2514 }
 0xd2b   :  { %v1561_v62 = vmul.f32 %v2515_v58, %v2501_v14  ;;  %v1718_v39 = vpop.permute.xlu2 %1717 }
 0xd2c   :  { %v1723_v31 = vsel %vm623_vm9, %v1718_v39, 0 }
 0xd2d   :  { %v1569_v47 = vpack.c.bf16 %v1561_v62, %v1561_v62  ;;  %1732 = vmatpush.bf16.msrb.mxu2 %v1723_v31 }
 0xd2e   :  { %v1616_v30 = vpop.f32.mrf.mxu1 }
 0xd2f   :  { %2234 = vmatmul.msk.bf16.vlgmr.msrb.gmra.mxu3 %vm323_vm8, %v1569_v47 }
 0xd30   :  { %2233 = vmatmul.msk.bf16.vlgmr.msrb.gmra.mxu2 %vm323_vm8, %v1568_v48 }
 0xd31   :  { %2000 = vmatpush.bf16.msra.mxu2 %v2315_v21 }
 0xd3d   :  { %v1590_v61 = vpop.f32.mrf.mxu0 }
 0xd43   :  { %v1662_v18 = vpop.f32.mrf.mxu3 }
 0xd45   :  { %v1592_v63 = vpop.f32.mrf.mxu0 }
 0xd4b   :  { %v1664_v6 = vpop.f32.mrf.mxu3 }
 0xd59   :  { %v1710_v11 = vpop.f32.mrf.mxu1 }
 0xd61   :  { %v1712_v24 = vpop.f32.mrf.mxu1 }
 0xd6c   :  { %v1638_v8 = vpop.f32.mrf.mxu2 }
 0xd6d   :  { %v2410_v42 = vpack.i.bf16 %v1662_v18, %v1638_v8  ;;  %v1867_v8 = vperm.slane %v2958_v12, 3 }
 0xd6f   :  { %2411 = vrot.lane.b32.xlu2 %v2410_v42, %s2544_s17 }
 0xd74   :  { %v1640_v20 = vpop.f32.mrf.mxu2 }
 0xd80   :  { %v1686_v0 = vpop.f32.mrf.mxu0 }
 0xd81   :  { %v2415_v1 = vpack.i.bf16 %v1710_v11, %v1686_v0 }
 0xd83   :  { %2416 = vrot.lane.b32.xlu1 %v2415_v1, %s2546_s19 }
 0xd88   :  { %v1688_v2 = vpop.f32.mrf.mxu0 }
 0xdb2   :  { %v1758_v22 = vpop.f32.mrf.mxu3 }
 0xdb3   :  { %v1734_v5 = vpop.f32.mrf.mxu2 }
 0xdb4   :  { %v2420_v13 = vpack.i.bf16 %v1758_v22, %v1734_v5 }
 0xdb6   :  { %2421 = vrot.lane.b32.xlu0 %v2420_v13, %s2545_s18 }
 0xdba   :  { %v1760_v55 = vpop.f32.mrf.mxu3 }
 0xdbb   :  { %v1736_v14 = vpop.f32.mrf.mxu2 }
 0xdc9   :  { %v2412_v7 = vpop.permute.xlu2 %2411 }
 0xdca   :  { %v2414_v19 = vunpack.i.h.bf16 %v2412_v7  ;;  %v2413_v4 = vunpack.i.l.bf16 %v2412_v7  ;;  %v2314_v7 = vld [vmem:[%s3237_s7 + $0x30] sm:$0xff] }
 0xdcb   :  { %2001 = vmatpush.bf16.msra.mxu2 %v2314_v7 }
 0xdcc   :  { %v1786_v3 = vsel %vm323_vm8, %v1590_v61, %v2413_v4  ;;  %v1787_v15 = vsel %vm323_vm8, %v1614_v17, %v2414_v19  ;;  %v2313_v19 = vld [vmem:[%s3237_s7 + $0x28] sm:$0xff] }
 0xdcf   :  { %2002 = vmatpush.bf16.msra.mxu2 %v2313_v19 }
 0xdf5   :  { %v2417_v25 = vpop.permute.xlu1 %2416 }
 0xdf6   :  { %v2419_v32 = vunpack.i.h.bf16 %v2417_v25  ;;  %v2418_v23 = vunpack.i.l.bf16 %v2417_v25 }
 0xdf8   :  { %v1789_v10 = vsel %vm834_vm10, %v1787_v15, %v2419_v32  ;;  %v1788_v36 = vsel %vm834_vm10, %v1786_v3, %v2418_v23 }
 0xe28   :  { %v2422_v27 = vpop.permute.xlu0 %2421 }
 0xe29   :  { %v2424_v16 = vunpack.i.h.bf16 %v2422_v27  ;;  %v2423_v34 = vunpack.i.l.bf16 %v2422_v27 }
 0xe2b   :  { %v1790_v35 = vsel %vm837_vm11, %v1788_v36, %v2423_v34  ;;  %v1791_v9 = vsel %vm837_vm11, %v1789_v10, %v2424_v16  ;;  %v2312_v16 = vld [vmem:[%s3237_s7 + $0x20] sm:$0xff] }
 0xe2c   :  { %v1792_v37 = vpack.c.bf16 %v1791_v9, %v1790_v35  ;;  %2003 = vmatpush.bf16.msra.mxu2 %v2312_v16 }
 0xe2e   :  { %2247 = vmatmul.msk.bf16.vlgmr.msra.gmra.mxu0 %vm50_vm0, %v1792_v37 }
 0xeab   :  { %v1822_v38 = vpop.f32.mrf.mxu0 }
 0xeac   :  { %v1827_v40 = vpack.c.bf16 %v1822_v38, %v1822_v38 }
 0xeae   :  { %v1829_v33 = vunpack.c.l.bf16 %v1827_v40 }
 0xeb0   :  { %v3150_v41 = vadd.f32 %v1829_v33, %v2918_v54  ;;  %v2311_v54 = vld [vmem:[%s3236_s6 + $0x18] sm:$0xff] }
 0xeb1   :  { %1897 = vmatpush.bf16.msrb.mxu1 %v2311_v54 }
 0xeb2   :  { %v1833_v56 = vmul.f32 %v3150_v41, %v3150_v41 }
 0xeb3   :  { %v1824_v43 = vpop.f32.mrf.mxu0 }
 0xeb4   :  { %v1828_v44 = vpack.c.bf16 %v1824_v43, %v1824_v43  ;;  %v1835_v45 = vsel %vm50_vm0, %v1833_v56, 0.0 }
 0xeb5   :  { %1836 = vadd.xlane.f32.xlu2 %v1835_v45  ;;  %1898 = vmatpush.bf16.msrb.mxu1 %v2310_v51 }
 0xeb6   :  { %v1830_v46 = vunpack.c.l.bf16 %v1828_v44 }
 0xeb8   :  { %v3156_v29 = vadd.f32 %v1830_v46, %v2924_v49 }
 0xeba   :  { %v1834_v26 = vmul.f32 %v3156_v29, %v3156_v29 }
 0xebc   :  { %v1838_v50 = vsel %vm50_vm0, %v1834_v26, 0.0 }
 0xebd   :  { %1839 = vadd.xlane.f32.xlu1 %v1838_v50 }
 0xf28   :  { %v1837_v53 = vpop.xlane.xlu2 %1836 }
 0xf29   :  { %v1841_v52 = vmul.f32 %v1837_v53, %v2652_v28 }
 0xf2b   :  { %v1843_v49 = vadd.f32 1e-05, %v1841_v52 }
 0xf2d   :  { %2516 = vrsqrt.f32 %v1843_v49  ;;  %vm1851_vm9 = vweird.f32 %v1843_v49 }
 0xf30   :  { %v1840_v17 = vpop.xlane.xlu1 %1839 }
 0xf31   :  { %v1842_v57 = vmul.f32 %v1840_v17, %v2652_v28 }
 0xf33   :  { %v2517_v58 = vpop.eup %2516  ;;  %v1844_v60 = vadd.f32 1e-05, %v1842_v57 }
 0xf34   :  { %v1846_v62 = vmul.f32 %v2517_v58, %v1843_v49  ;;  %vm1852_vm8 = vweird.f32 %v2517_v58 }
 0xf35   :  { %2518 = vrsqrt.f32 %v1844_v60  ;;  %vm1853_vm7 = vmor %vm1851_vm9, %vm1852_vm8  ;;  %vm1861_vm13 = vweird.f32 %v1844_v60 }
 0xf36   :  { %v1847_v39 = vmul.f32 %v2517_v58, %v1846_v62 }
 0xf38   :  { %v1848_v31 = vmul.f32 0.5, %v1847_v39 }
 0xf3a   :  { %v1849_v47 = vsub.f32 1.5, %v1848_v31 }
 0xf3b   :  { %v2519_v48 = vpop.eup %2518 }
 0xf3c   :  { %v1856_v30 = vmul.f32 %v2519_v48, %v1844_v60  ;;  %v1850_v61 = vmul.f32 %v2517_v58, %v1849_v47  ;;  %vm1862_vm12 = vweird.f32 %v2519_v48 }
 0xf3d   :  { %vm1863_vm14 = vmor %vm1861_vm13, %vm1862_vm12 }
 0xf3e   :  { %v1857_v18 = vmul.f32 %v2519_v48, %v1856_v30  ;;  %v1854_v6 = vsel %vm1853_vm7, %v2517_v58, %v1850_v61 }
 0xf3f   :  { %v1865_v42 = vmul.f32 %v1854_v6, %v3150_v41 }
 0xf40   :  { %v1858_v63 = vmul.f32 0.5, %v1857_v18 }
 0xf41   :  { %v1868_v1 = vmul.f32 %v1867_v8, %v1865_v42 }
 0xf42   :  { %v1859_v11 = vsub.f32 1.5, %v1858_v63 }
 0xf44   :  { %v1860_v24 = vmul.f32 %v2519_v48, %v1859_v11 }
 0xf46   :  { %v1864_v20 = vsel %vm1863_vm14, %v2519_v48, %v1860_v24 }
 0xf47   :  { %v1866_v0 = vmul.f32 %v1864_v20, %v3156_v29 }
 0xf49   :  { %v1869_v2 = vmul.f32 %v1867_v8, %v1866_v0  ;;  %v2056_v0 = vld [vmem:[%s3238_s8 + $0x18] sm:$0xff] }
 0xf4a   :  { %2076 = vmatpush.msra.mxu3 %v2056_v0 }
 0xf4b   :  { %v1870_v22 = vpack.c.bf16 %v1869_v2, %v1868_v1  ;;  %v2054_v1 = vld [vmem:[%s3238_s8 + $0x8] sm:$0xff] }
 0xf4d   :  { %2260 = vmatmul.msk.bf16.vlgmr.msrb.gmra.mxu1 %vm50_vm0, %v1870_v22 }
 0xfca   :  { %v1900_v5 = vpop.f32.mrf.mxu1 }
 0xfcb   :  { %v1905_v13 = vpack.c.bf16 %v1900_v5, %v1900_v5 }
 0xfcd   :  { %v1907_v12 = vunpack.c.l.bf16 %v1905_v13 }
 0xfcf   :  { %v2261_v4 = vmul.f32 -1.442695, %v1907_v12 }
 0xfd1   :  { %2520 = vpow2.f32 %v2261_v4 }
 0xfd2   :  { %v1902_v55 = vpop.f32.mrf.mxu1 }
 0xfd3   :  { %v1906_v14 = vpack.c.bf16 %v1902_v55, %v1902_v55 }
 0xfd5   :  { %v1908_v59 = vunpack.c.l.bf16 %v1906_v14 }
 0xfd7   :  { %v2425_v25 = vpack.i.bf16 %v1908_v59, %v1907_v12  ;;  %v2262_v32 = vmul.f32 -1.442695, %v1908_v59  ;;  %v2521_v23 = vpop.eup %2520 }
 0xfd8   :  { %v1915_v3 = vadd.f32 1.0, %v2521_v23  ;;  %v2535_v23 = vld [vmem:[%s3234_s3] sm:$0x1f] }
 0xfd9   :  { %2426 = vrot.lane.b32.xlu0 %v2425_v25, %s2539_s29  ;;  %2522 = vpow2.f32 %v2262_v32 }
 0xfda   :  { %2524 = vrcp.f32 %v1915_v3  ;;  %vm1922_vm3 = vweird.f32 %v1915_v3  ;;  %v1928_v43 = vand.u32 2147483648, %v1915_v3  ;;  %v1926_v45 = vand.u32 2147483647, %v1915_v3 }
 0xfdc   :  { %v1929_v54 = vor.u32 1.1754944e-38, %v1928_v43  ;;  %vm1927_vm8 = vcmp.eq.f32.partialorder %v1926_v45, 8.507059e+37 }
 0xfdf   :  { %v2523_v27 = vpop.eup %2522 }
 0xfe0   :  { %v1916_v15 = vadd.f32 1.0, %v2523_v27  ;;  %v2525_v34 = vpop.eup %2524  ;;  %v2050_v27 = vperm.slane %v2535_v23, 4 }
 0xfe1   :  { %v1918_v36 = vmul.f32 %v2525_v34, %v1915_v3  ;;  %vm1923_vm1 = vweird.f32 %v2525_v34 }
 0xfe2   :  { %2526 = vrcp.f32 %v1916_v15  ;;  %v1943_v44 = vand.u32 2147483648, %v1916_v15  ;;  %vm1924_vm4 = vmor %vm1922_vm3, %vm1923_vm1  ;;  %vm1937_vm5 = vweird.f32 %v1916_v15  ;;  %v1941_v46 = vand.u32 2147483647, %v1916_v15 }
 0xfe3   :  { %v1919_v9 = vsub.f32 1.0, %v1918_v36 }
 0xfe4   :  { %v1944_v53 = vor.u32 1.1754944e-38, %v1943_v44  ;;  %vm1942_vm9 = vcmp.eq.f32.partialorder %v1941_v46, 8.507059e+37 }
 0xfe5   :  { %v1920_v38 = vmul.f32 %v2525_v34, %v1919_v9 }
 0xfe7   :  { %v1921_v33 = vadd.f32 %v2525_v34, %v1920_v38  ;;  %v2088_v38 = vld [vmem:[%s3239_s9 + $0x8] sm:$0xff] }
 0xfe8   :  { %v2527_v10 = vpop.eup %2526  ;;  %2109 = vmatpush.msrb.mxu0 %v2088_v38 }
 0xfe9   :  { %v1933_v35 = vmul.f32 %v2527_v10, %v1916_v15  ;;  %vm1938_vm2 = vweird.f32 %v2527_v10  ;;  %v1925_v26 = vsel %vm1924_vm4, %v2525_v34, %v1921_v33  ;;  %v2536_v33 = vld [vmem:[%s3231_s2] sm:$0x3] }
 0xfea   :  { %vm1939_vm6 = vmor %vm1937_vm5, %vm1938_vm2  ;;  %v1930_v52 = vsel %vm1927_vm8, %v1929_v54, %v1925_v26 }
 0xfeb   :  { %v1934_v37 = vsub.f32 1.0, %v1933_v35  ;;  %v1947_v17 = vmul.f32 %v1930_v52, %v1907_v12 }
 0xfed   :  { %v1935_v40 = vmul.f32 %v2527_v10, %v1934_v37 }
 0xfef   :  { %v1936_v56 = vadd.f32 %v2527_v10, %v1935_v40  ;;  %v2087_v40 = vld [vmem:[%s3239_s9] sm:$0xff] }
 0xff0   :  { %2110 = vmatpush.msrb.mxu0 %v2087_v40 }
 0xff1   :  { %v1940_v50 = vsel %vm1939_vm6, %v2527_v10, %v1936_v56  ;;  %v2057_v56 = vperm.slane %v2536_v33, 1 }
 0xff2   :  { %v1945_v51 = vsel %vm1942_vm9, %v1944_v53, %v1940_v50 }
 0xff3   :  { %v1948_v57 = vmul.f32 %v1945_v51, %v1908_v59 }
0x104b   :  { %v2427_v49 = vpop.permute.xlu0 %2426 }
0x104c   :  { %v2429_v58 = vunpack.i.h.bf16 %v2427_v49  ;;  %v2428_v60 = vunpack.i.l.bf16 %v2427_v49 }
0x104e   :  { %v1957_v62 = vmul.f32 %v2428_v60, %v1947_v17  ;;  %v1958_v39 = vmul.f32 %v2429_v58, %v1948_v57 }
0x1050   :  { %v1959_v31 = vpack.c.bf16 %v1958_v39, %v1957_v62 }
0x1052   :  { %2287 = vmatmul.msk.bf16.vlgmr.msra.gmra.mxu2 %vm1038_vm15, %v1959_v31 }
0x10d5   :  { %v2005_v47 = vpop.f32.mrf.mxu2 }
0x10d6   :  { %v2010_v48 = vpack.c.bf16 %v2005_v47, %v2005_v47 }
0x10d8   :  { %v2012_v30 = vunpack.c.l.bf16 %v2010_v48 }
0x10da   :  { %v2014_v61 = vadd.f32 %v2012_v30, %v3150_v41  ;;  %v2055_v41 = vld [vmem:[%s3238_s8 + $0x10] sm:$0xff] }
0x10db   :  { %2077 = vmatpush.msra.mxu3 %v2055_v41 }
0x10dc   :  { %v2016_v18 = vmul.f32 %v2014_v61, %v2014_v61 }
0x10dd   :  { %v2007_v63 = vpop.f32.mrf.mxu2  ;;  %2078 = vmatpush.msra.mxu3 %v2054_v1 }
0x10de   :  { %v2011_v6 = vpack.c.bf16 %v2007_v63, %v2007_v63  ;;  %v2018_v11 = vsel %vm50_vm0, %v2016_v18, 0.0 }
0x10df   :  { %2019 = vadd.xlane.f32.xlu0 %v2018_v11 }
0x10e0   :  { %v2013_v24 = vunpack.c.l.bf16 %v2011_v6 }
0x10e2   :  { %v2015_v8 = vadd.f32 %v2013_v24, %v3156_v29  ;;  %v2053_v29 = vld [vmem:[%s3238_s8] sm:$0xff] }
0x10e3   :  { %2079 = vmatpush.msra.mxu3 %v2053_v29 }
0x10e4   :  { %v2017_v42 = vmul.f32 %v2015_v8, %v2015_v8 }
0x10e6   :  { %v2021_v20 = vsel %vm50_vm0, %v2017_v42, 0.0 }
0x10e7   :  { %2022 = vadd.xlane.f32.xlu2 %v2021_v20 }
0x1152   :  { %v2020_v2 = vpop.xlane.xlu0 %2019 }
0x1153   :  { %v2024_v22 = vmul.f32 %v2020_v2, %v2652_v28 }
0x1155   :  { %v2026_v5 = vadd.f32 1e-05, %v2024_v22 }
0x1157   :  { %2528 = vrsqrt.f32 %v2026_v5  ;;  %vm2034_vm7 = vweird.f32 %v2026_v5 }
0x115a   :  { %v2023_v13 = vpop.xlane.xlu2 %2022 }
0x115b   :  { %v2025_v55 = vmul.f32 %v2023_v13, %v2652_v28 }
0x115d   :  { %v2529_v14 = vpop.eup %2528  ;;  %v2027_v21 = vadd.f32 1e-05, %v2025_v55 }
0x115e   :  { %v2029_v12 = vmul.f32 %v2529_v14, %v2026_v5  ;;  %vm2035_vm15 = vweird.f32 %v2529_v14 }
0x115f   :  { %2530 = vrsqrt.f32 %v2027_v21  ;;  %vm2036_vm12 = vmor %vm2034_vm7, %vm2035_vm15  ;;  %vm2044_vm14 = vweird.f32 %v2027_v21 }
0x1160   :  { %v2030_v59 = vmul.f32 %v2529_v14, %v2029_v12 }
0x1162   :  { %v2031_v7 = vmul.f32 0.5, %v2030_v59 }
0x1164   :  { %v2032_v25 = vsub.f32 1.5, %v2031_v7 }
0x1165   :  { %v2531_v19 = vpop.eup %2530 }
0x1166   :  { %v2033_v4 = vmul.f32 %v2529_v14, %v2032_v25  ;;  %v2039_v32 = vmul.f32 %v2531_v19, %v2027_v21  ;;  %vm2045_vm13 = vweird.f32 %v2531_v19 }
0x1167   :  { %vm2046_vm1 = vmor %vm2044_vm14, %vm2045_vm13 }
0x1168   :  { %v2037_v3 = vsel %vm2036_vm12, %v2529_v14, %v2033_v4  ;;  %v2040_v28 = vmul.f32 %v2531_v19, %v2039_v32 }
0x1169   :  { %v2048_v15 = vmul.f32 %v2037_v3, %v2014_v61 }
0x116a   :  { %v2041_v16 = vmul.f32 0.5, %v2040_v28 }
0x116b   :  { %v2051_v34 = vmul.f32 %v2050_v27, %v2048_v15 }
0x116c   :  { %v2042_v10 = vsub.f32 1.5, %v2041_v16 }
0x116d   :  { %2288 = vmatmul.msk.f32.vlgmr.msra.gmra.mxu3 %vm50_vm0, %v2051_v34 }
0x116e   :  { %v2043_v36 = vmul.f32 %v2531_v19, %v2042_v10 }
0x1170   :  { %v2047_v35 = vsel %vm2046_vm1, %v2531_v19, %v2043_v36 }
0x1171   :  { %v2049_v9 = vmul.f32 %v2047_v35, %v2015_v8 }
0x1173   :  { %v2052_v37 = vmul.f32 %v2050_v27, %v2049_v9 }
0x1175   :  { %2289 = vmatmul.msk.f32.gmra.mxu3 %vm50_vm0, %v2052_v37 }
0x11f0   :  { %v2081_v43 = vpop.f32.mrf.mxu3 }
0x11f1   :  { %v2082_v44 = vadd.f32 %v2081_v43, %v2057_v56 }
0x11f3   :  { %2290 = vmatmul.msk.f32.vlgmr.msrb.gmra.mxu0 %vm834_vm10, %v2082_v44 }
0x11f8   :  { %v2084_v45 = vpop.f32.mrf.mxu3 }
0x11f9   :  { %v2085_v46 = vadd.f32 %v2084_v45, %v2057_v56 }
0x11fb   :  { %2291 = vmatmul.msk.f32.gmra.mxu0 %vm834_vm10, %v2085_v46 }
0x1270   :  { %v2112_v26 = vpop.f32.mrf.mxu0 }
0x1271   :  { %2118 = vst.msk [vmem:[%s3240_s11] sm:$0xff] %vm837_vm11, %v2112_v26 }
0x1278   :  { %v2115_v50 = vpop.f32.mrf.mxu0 }
0x1279   :  { %2119 = vst.msk [vmem:[%s3240_s11 + $0x8] sm:$0xff] %vm837_vm11, %v2115_v50 }

</bundles_post_ra>
